<compile_context>
chip_gen: v7x
topology: tpu7x:2x2x1
jax: 0.10.0
libtpu: 0.0.40
codegen_flags: <defaults>
</compile_context>

<pallas_src>
import functools

import jax
import jax.numpy as jnp
import numpy as np
from jax import lax
from jax.experimental import pallas as pl
from jax.experimental.pallas import tpu as pltpu

# Small, deterministic hyperparameters consistent with the module's __init__.
NUM_VOCAB = 32
EMBED_DIM = 16
HIDDEN_DIM = 32
NUM_LAYERS = 2
OUT_NODE = 1          # kernel's final projection assumes OUT_NODE == 1
BATCH = 2
SEQ = 8
# TODO(synk): nn.LSTM inter-layer dropout is a training-only op; with
# drop_percent=0 (the default used here) it is a no-op and is not implemented.


def _attention_classifier_kernel(*refs, num_layers, T, B_pad, H, V):
    """Single-invocation kernel (grid=()): all operands live fully in VMEM."""
    tok_ref = refs[0]                       # (T*B_pad, 1) int32, time-major
    fused0_ref = refs[1]                    # (V, 4H)  = emb_table @ W_ih0^T
    w_hh0_ref = refs[2]                     # (H, 4H)
    bias0_ref = refs[3]                     # (1, 4H)
    idx = 4
    upper = []
    for _ in range(num_layers - 1):
        upper.append(refs[idx:idx + 3])     # (w_ih_T, w_hh_T, bias)
        idx += 3
    fc_w_ref = refs[idx]                    # (1, H)
    fc_b_ref = refs[idx + 1]                # (1, OUT_NODE)
    out_ref = refs[idx + 2]                 # (B_pad, OUT_NODE)
    seq_ref = refs[idx + 3]                 # VMEM scratch (T, B_pad, H)

    f32 = jnp.float32
    TB = T * B_pad

    # ---- Embedding gather fused with layer-0 input projection. --------------
    # onehot is exact (0/1 rows), so onehot @ (emb @ W_ih0^T) == emb[tok] @ W_ih0^T.
    tok = tok_ref[...]                                               # (TB, 1)
    iota_v = lax.broadcasted_iota(jnp.int32, (TB, V), 1)
    onehot = (tok == iota_v).astype(f32)                             # (TB, V)
    gx0 = (jnp.dot(onehot, fused0_ref[...], preferred_element_type=f32)
           + bias0_ref[...])                                         # (TB, 4H)

    w_hh = [w_hh0_ref[...]] + [u[1][...] for u in upper]             # (H, 4H)
    w_ih_up = [u[0][...] for u in upper]                             # (H, 4H)
    bias_up = [u[2][...] for u in upper]                             # (1, 4H)

    h = [jnp.zeros((B_pad, H), f32) for _ in range(num_layers)]
    c = [jnp.zeros((B_pad, H), f32) for _ in range(num_layers)]

    # TODO(synk): W_hh could be kept resident in the MXU across the T steps via
    # pltpu.matmul_push_rhs / matmul_acc_lhs / matmul_pop (MRB accumulate on
    # v7x); kept as jnp.dot for lowering robustness at these tiny shapes.
    def lstm_step(gates_pre, h_prev, c_prev, w_hh_l):
        gates = gates_pre + jnp.dot(h_prev, w_hh_l,
                                    preferred_element_type=f32)      # (B_pad,4H)
        sig = jax.nn.sigmoid(gates)          # one full-vreg EUP pass (i,f,o)
        i_g = sig[:, 0 * H:1 * H]
        f_g = sig[:, 1 * H:2 * H]
        o_g = sig[:, 3 * H:4 * H]
        g_g = jnp.tanh(gates[:, 2 * H:3 * H])   # EUP only on the g lanes
        c_new = f_g * c_prev + i_g * g_g
        h_new = o_g * jnp.tanh(c_new)
        return h_new, c_new

    # ---- Wavefront over time: all layers advance inside one unrolled loop. --
    # Layer l>=1's pre-activation is computed per step from h_{l-1,t}, so the
    # scheduler can overlap layer-1 step t with layer-0 step t+1.
    for t in range(T):                       # T static -> fully unrolled
        h[0], c[0] = lstm_step(gx0[t * B_pad:(t + 1) * B_pad, :],
                               h[0], c[0], w_hh[0])
        x_t = h[0]
        for l in range(1, num_layers):
            gx_t = (jnp.dot(x_t, w_ih_up[l - 1], preferred_element_type=f32)
                    + bias_up[l - 1])                                # (B_pad,4H)
            h[l], c[l] = lstm_step(gx_t, h[l], c[l], w_hh[l])
            x_t = h[l]
        seq_ref[t] = x_t                     # last layer's output at step t

    # ---- Attention epilogue: vectorized over the (T, B_pad, H) tile. --------
    h_last = h[num_layers - 1]                                       # (B_pad, H)
    seq = seq_ref[...]                                               # (T,B_pad,H)
    scores = jnp.sum(seq * h_last[None, :, :], axis=-1,
                     keepdims=True)                                  # (T,B_pad,1)
    m = jnp.max(scores, axis=0, keepdims=True)                       # (1,B_pad,1)
    e = jnp.exp(scores - m)                                          # (T,B_pad,1)
    denom = jnp.sum(e, axis=0, keepdims=True)                        # (1,B_pad,1)
    attn = e * pl.reciprocal(denom, approx=True)                     # (T,B_pad,1)
    context = jnp.sum(seq * attn, axis=0)                            # (B_pad, H)

    # ---- Final linear (OUT_NODE == 1 -> lane reduce, no MXU) + sigmoid. -----
    logits = (jnp.sum(context * fc_w_ref[...], axis=-1, keepdims=True)
              + fc_b_ref[...])                                       # (B_pad, 1)
    out_ref[...] = jax.nn.sigmoid(logits)


def attention_classifier_forward(x_tokens, params):
    """Plain-JAX glue: token repack, weight layout / fusion prep, pallas_call."""
    emb_table = params["embedding"].astype(jnp.float32)     # (V, E)
    B, T = x_tokens.shape
    V = emb_table.shape[0]
    H = HIDDEN_DIM
    B_pad = ((max(B, 1) + 7) // 8) * 8                       # sublane padding

    # Time-major, batch padded to the sublane count, flattened to (T*B_pad, 1).
    tok = jnp.transpose(x_tokens.astype(jnp.int32))          # (T, B)
    tok = jnp.pad(tok, ((0, 0), (0, B_pad - B)))             # (T, B_pad)
    tok = tok.reshape(T * B_pad, 1)

    lstm = params["lstm"]
    w_ih0, w_hh0, b_ih0, b_hh0 = lstm[0]
    # Fuse embedding with layer-0's input projection: (V, E) @ (E, 4H) -> (V, 4H).
    fused0 = jnp.dot(emb_table, w_ih0.T.astype(jnp.float32),
                     precision=lax.Precision.HIGHEST)

    inputs = [tok, fused0,
              w_hh0.T.astype(jnp.float32),                            # (H, 4H)
              (b_ih0 + b_hh0).reshape(1, -1).astype(jnp.float32)]     # (1, 4H)
    for (w_ih, w_hh, b_ih, b_hh) in lstm[1:]:
        inputs += [w_ih.T.astype(jnp.float32),                        # (H, 4H)
                   w_hh.T.astype(jnp.float32),                        # (H, 4H)
                   (b_ih + b_hh).reshape(1, -1).astype(jnp.float32)]  # (1, 4H)
    inputs += [params["fc_w"].reshape(1, -1).astype(jnp.float32),     # (1, H)
               params["fc_b"].reshape(1, -1).astype(jnp.float32)]     # (1, 1)

    kernel = functools.partial(_attention_classifier_kernel,
                               num_layers=len(lstm),
                               T=T, B_pad=B_pad, H=H, V=V)
    vmem = pl.BlockSpec(memory_space=pltpu.MemorySpace.VMEM)
    # Footprint ~50 KB total: no grid / tiling needed on any generation.  If B,
    # H or V scale up, add a grid over batch with dimension_semantics=
    # ("parallel",) so v7x's two TensorCores each take half the batch.
    out = pl.pallas_call(
        kernel,
        out_shape=jax.ShapeDtypeStruct((B_pad, OUT_NODE), jnp.float32),
        in_specs=[vmem] * len(inputs),
        out_specs=vmem,
        scratch_shapes=[pltpu.VMEM((T, B_pad, H), jnp.float32)],
    )(*inputs)
    return out[:B]


def reference_forward(x_tokens, params):
    """Pure-JAX reference matching the PyTorch module semantics."""
    emb = jnp.take(params["embedding"], x_tokens, axis=0)     # (B, T, E)
    B, T, _ = emb.shape
    H = HIDDEN_DIM
    layer_in = emb
    h_last = None
    for (w_ih, w_hh, b_ih, b_hh) in params["lstm"]:
        h = jnp.zeros((B, H), jnp.float32)
        c = jnp.zeros((B, H), jnp.float32)
        outs = []
        for t in range(T):
            gates = layer_in[:, t, :] @ w_ih.T + h @ w_hh.T + b_ih + b_hh
            i_g, f_g, g_g, o_g = jnp.split(gates, 4, axis=-1)
            i_g = jax.nn.sigmoid(i_g)
            f_g = jax.nn.sigmoid(f_g)
            g_g = jnp.tanh(g_g)
            o_g = jax.nn.sigmoid(o_g)
            c = f_g * c + i_g * g_g
            h = o_g * jnp.tanh(c)
            outs.append(h)
        layer_in = jnp.stack(outs, axis=1)                    # (B, T, H)
        h_last = h
    lstm_out = layer_in
    scores = jnp.einsum("bth,bh->bt", lstm_out, h_last)
    attn = jax.nn.softmax(scores, axis=1)
    context = jnp.einsum("bth,bt->bh", lstm_out, attn)
    logits = context @ params["fc_w"].T + params["fc_b"]
    return jax.nn.sigmoid(logits)


def init_params(key):
    ks = jax.random.split(key, 4 + 4 * NUM_LAYERS)
    scale = 0.1
    params = {
        "embedding": scale * jax.random.normal(
            ks[0], (NUM_VOCAB, EMBED_DIM), jnp.float32),
        "fc_w": scale * jax.random.normal(
            ks[1], (OUT_NODE, HIDDEN_DIM), jnp.float32),
        "fc_b": scale * jax.random.normal(ks[2], (OUT_NODE,), jnp.float32),
        "lstm": [],
    }
    for l in range(NUM_LAYERS):
        in_dim = EMBED_DIM if l == 0 else HIDDEN_DIM
        kw = jax.random.split(ks[4 + l], 4)
        params["lstm"].append((
            scale * jax.random.normal(kw[0], (4 * HIDDEN_DIM, in_dim), jnp.float32),
            scale * jax.random.normal(kw[1], (4 * HIDDEN_DIM, HIDDEN_DIM), jnp.float32),
            scale * jax.random.normal(kw[2], (4 * HIDDEN_DIM,), jnp.float32),
            scale * jax.random.normal(kw[3], (4 * HIDDEN_DIM,), jnp.float32),
        ))
    return params


if __name__ == "__main__":
    key = jax.random.PRNGKey(0)
    k_param, k_x = jax.random.split(key)
    params = init_params(k_param)
    x = jax.random.randint(k_x, (BATCH, SEQ), 0, NUM_VOCAB, dtype=jnp.int32)

    fwd = jax.jit(attention_classifier_forward)
    out = jax.block_until_ready(fwd(x, params))

    ref = jax.block_until_ready(reference_forward(x, params))
    np.testing.assert_allclose(np.asarray(out), np.asarray(ref),
                               rtol=1e-3, atol=1e-3)
    print("KERNEL_OK")
</pallas_src>

<mosaic_0001>
module attributes {stable_mosaic.version = 11 : i64} {
  func.func @_attention_classifier_kernel(%arg0: memref<64x1xi32, #tpu.memory_space<vmem>>, %arg1: memref<32x128xf32, #tpu.memory_space<vmem>>, %arg2: memref<32x128xf32, #tpu.memory_space<vmem>>, %arg3: memref<1x128xf32, #tpu.memory_space<vmem>>, %arg4: memref<32x128xf32, #tpu.memory_space<vmem>>, %arg5: memref<32x128xf32, #tpu.memory_space<vmem>>, %arg6: memref<1x128xf32, #tpu.memory_space<vmem>>, %arg7: memref<1x32xf32, #tpu.memory_space<vmem>>, %arg8: memref<1x1xf32, #tpu.memory_space<vmem>>, %arg9: memref<8x1xf32, #tpu.memory_space<vmem>>, %arg10: memref<8x8x32xf32, #tpu.memory_space<vmem>>) attributes {dimension_semantics = [], scalar_prefetch = 0 : i64, scratch_operands = 1 : i64, tpu.core_type = #tpu.core_type<tc>} {
    %c0 = arith.constant 0 : index
    %c0_0 = arith.constant 0 : index
    %0 = vector.load %arg0[%c0, %c0_0] : memref<64x1xi32, #tpu.memory_space<vmem>>, vector<64x1xi32>
    %1 = tpu.iota {dimensions = array<i32: 1>} : vector<64x32xi32>
    %2 = vector.broadcast %0 : vector<64x1xi32> to vector<64x32xi32>
    %3 = arith.cmpi eq, %2, %1 : vector<64x32xi32>
    %4 = arith.extui %3 : vector<64x32xi1> to vector<64x32xi32>
    %5 = arith.sitofp %4 : vector<64x32xi32> to vector<64x32xf32>
    %c0_1 = arith.constant 0 : index
    %c0_2 = arith.constant 0 : index
    %6 = vector.load %arg1[%c0_1, %c0_2] : memref<32x128xf32, #tpu.memory_space<vmem>>, vector<32x128xf32>
    %cst = arith.constant dense<0.000000e+00> : vector<64x128xf32>
    %7 = tpu.matmul %5, %6, %cst {dimension_numbers = #tpu.dot_dimension_numbers<[1], [0], [0], [1], [0, 0, 1, 1], [], []>} : vector<64x32xf32>, vector<32x128xf32>, vector<64x128xf32> -> vector<64x128xf32>
    %c0_3 = arith.constant 0 : index
    %c0_4 = arith.constant 0 : index
    %8 = vector.load %arg3[%c0_3, %c0_4] : memref<1x128xf32, #tpu.memory_space<vmem>>, vector<1x128xf32>
    %9 = vector.broadcast %8 : vector<1x128xf32> to vector<64x128xf32>
    %10 = arith.addf %7, %9 : vector<64x128xf32>
    %c0_5 = arith.constant 0 : index
    %c0_6 = arith.constant 0 : index
    %11 = vector.load %arg2[%c0_5, %c0_6] : memref<32x128xf32, #tpu.memory_space<vmem>>, vector<32x128xf32>
    %c0_7 = arith.constant 0 : index
    %c0_8 = arith.constant 0 : index
    %12 = vector.load %arg5[%c0_7, %c0_8] : memref<32x128xf32, #tpu.memory_space<vmem>>, vector<32x128xf32>
    %c0_9 = arith.constant 0 : index
    %c0_10 = arith.constant 0 : index
    %13 = vector.load %arg4[%c0_9, %c0_10] : memref<32x128xf32, #tpu.memory_space<vmem>>, vector<32x128xf32>
    %c0_11 = arith.constant 0 : index
    %c0_12 = arith.constant 0 : index
    %14 = vector.load %arg6[%c0_11, %c0_12] : memref<1x128xf32, #tpu.memory_space<vmem>>, vector<1x128xf32>
    %cst_13 = arith.constant 0.000000e+00 : f32
    %15 = vector.broadcast %cst_13 : f32 to vector<8x32xf32>
    %cst_14 = arith.constant 0.000000e+00 : f32
    %16 = vector.broadcast %cst_14 : f32 to vector<8x32xf32>
    %cst_15 = arith.constant 0.000000e+00 : f32
    %17 = vector.broadcast %cst_15 : f32 to vector<8x32xf32>
    %cst_16 = arith.constant 0.000000e+00 : f32
    %18 = vector.broadcast %cst_16 : f32 to vector<8x32xf32>
    %19 = vector.extract_strided_slice %10 {offsets = [0, 0], sizes = [8, 128], strides = [1, 1]} : vector<64x128xf32> to vector<8x128xf32>
    %cst_17 = arith.constant dense<0.000000e+00> : vector<8x128xf32>
    %20 = tpu.matmul %15, %11, %cst_17 {dimension_numbers = #tpu.dot_dimension_numbers<[1], [0], [0], [1], [0, 0, 1, 1], [], []>} : vector<8x32xf32>, vector<32x128xf32>, vector<8x128xf32> -> vector<8x128xf32>
    %21 = arith.addf %19, %20 : vector<8x128xf32>
    %22 = arith.negf %21 : vector<8x128xf32>
    %23 = math.exp %22 : vector<8x128xf32>
    %cst_18 = arith.constant 1.000000e+00 : f32
    %24 = vector.broadcast %cst_18 : f32 to vector<8x128xf32>
    %25 = arith.addf %24, %23 : vector<8x128xf32>
    %26 = arith.divf %24, %25 : vector<8x128xf32>
    %27 = vector.extract_strided_slice %26 {offsets = [0, 0], sizes = [8, 32], strides = [1, 1]} : vector<8x128xf32> to vector<8x32xf32>
    %28 = vector.extract_strided_slice %26 {offsets = [0, 32], sizes = [8, 32], strides = [1, 1]} : vector<8x128xf32> to vector<8x32xf32>
    %29 = vector.extract_strided_slice %26 {offsets = [0, 96], sizes = [8, 32], strides = [1, 1]} : vector<8x128xf32> to vector<8x32xf32>
    %30 = vector.extract_strided_slice %21 {offsets = [0, 64], sizes = [8, 32], strides = [1, 1]} : vector<8x128xf32> to vector<8x32xf32>
    %31 = math.tanh %30 : vector<8x32xf32>
    %32 = arith.mulf %28, %17 : vector<8x32xf32>
    %33 = arith.mulf %27, %31 : vector<8x32xf32>
    %34 = arith.addf %32, %33 : vector<8x32xf32>
    %35 = math.tanh %34 : vector<8x32xf32>
    %36 = arith.mulf %29, %35 : vector<8x32xf32>
    %cst_19 = arith.constant dense<0.000000e+00> : vector<8x128xf32>
    %37 = tpu.matmul %36, %13, %cst_19 {dimension_numbers = #tpu.dot_dimension_numbers<[1], [0], [0], [1], [0, 0, 1, 1], [], []>} : vector<8x32xf32>, vector<32x128xf32>, vector<8x128xf32> -> vector<8x128xf32>
    %38 = vector.broadcast %14 : vector<1x128xf32> to vector<8x128xf32>
    %39 = arith.addf %37, %38 : vector<8x128xf32>
    %cst_20 = arith.constant dense<0.000000e+00> : vector<8x128xf32>
    %40 = tpu.matmul %16, %12, %cst_20 {dimension_numbers = #tpu.dot_dimension_numbers<[1], [0], [0], [1], [0, 0, 1, 1], [], []>} : vector<8x32xf32>, vector<32x128xf32>, vector<8x128xf32> -> vector<8x128xf32>
    %41 = arith.addf %39, %40 : vector<8x128xf32>
    %42 = arith.negf %41 : vector<8x128xf32>
    %43 = math.exp %42 : vector<8x128xf32>
    %cst_21 = arith.constant 1.000000e+00 : f32
    %44 = vector.broadcast %cst_21 : f32 to vector<8x128xf32>
    %45 = arith.addf %44, %43 : vector<8x128xf32>
    %46 = arith.divf %44, %45 : vector<8x128xf32>
    %47 = vector.extract_strided_slice %46 {offsets = [0, 0], sizes = [8, 32], strides = [1, 1]} : vector<8x128xf32> to vector<8x32xf32>
    %48 = vector.extract_strided_slice %46 {offsets = [0, 32], sizes = [8, 32], strides = [1, 1]} : vector<8x128xf32> to vector<8x32xf32>
    %49 = vector.extract_strided_slice %46 {offsets = [0, 96], sizes = [8, 32], strides = [1, 1]} : vector<8x128xf32> to vector<8x32xf32>
    %50 = vector.extract_strided_slice %41 {offsets = [0, 64], sizes = [8, 32], strides = [1, 1]} : vector<8x128xf32> to vector<8x32xf32>
    %51 = math.tanh %50 : vector<8x32xf32>
    %52 = arith.mulf %48, %18 : vector<8x32xf32>
    %53 = arith.mulf %47, %51 : vector<8x32xf32>
    %54 = arith.addf %52, %53 : vector<8x32xf32>
    %55 = math.tanh %54 : vector<8x32xf32>
    %56 = arith.mulf %49, %55 : vector<8x32xf32>
    %c0_22 = arith.constant 0 : index
    %c0_23 = arith.constant 0 : index
    %c0_24 = arith.constant 0 : index
    %57 = vector.load %arg10[%c0_22, %c0_23, %c0_24] : memref<8x8x32xf32, #tpu.memory_space<vmem>>, vector<1x8x32xf32>
    %58 = vector.shape_cast %57 : vector<1x8x32xf32> to vector<8x32xf32>
    %59 = vector.shape_cast %56 : vector<8x32xf32> to vector<1x8x32xf32>
    tpu.vector_store %arg10[%c0_22, %c0_23, %c0_24], %59 {strides = array<i32>} : memref<8x8x32xf32, #tpu.memory_space<vmem>>, vector<1x8x32xf32>,
    %60 = vector.extract_strided_slice %10 {offsets = [8, 0], sizes = [8, 128], strides = [1, 1]} : vector<64x128xf32> to vector<8x128xf32>
    %cst_25 = arith.constant dense<0.000000e+00> : vector<8x128xf32>
    %61 = tpu.matmul %36, %11, %cst_25 {dimension_numbers = #tpu.dot_dimension_numbers<[1], [0], [0], [1], [0, 0, 1, 1], [], []>} : vector<8x32xf32>, vector<32x128xf32>, vector<8x128xf32> -> vector<8x128xf32>
    %62 = arith.addf %60, %61 : vector<8x128xf32>
    %63 = arith.negf %62 : vector<8x128xf32>
    %64 = math.exp %63 : vector<8x128xf32>
    %cst_26 = arith.constant 1.000000e+00 : f32
    %65 = vector.broadcast %cst_26 : f32 to vector<8x128xf32>
    %66 = arith.addf %65, %64 : vector<8x128xf32>
    %67 = arith.divf %65, %66 : vector<8x128xf32>
    %68 = vector.extract_strided_slice %67 {offsets = [0, 0], sizes = [8, 32], strides = [1, 1]} : vector<8x128xf32> to vector<8x32xf32>
    %69 = vector.extract_strided_slice %67 {offsets = [0, 32], sizes = [8, 32], strides = [1, 1]} : vector<8x128xf32> to vector<8x32xf32>
    %70 = vector.extract_strided_slice %67 {offsets = [0, 96], sizes = [8, 32], strides = [1, 1]} : vector<8x128xf32> to vector<8x32xf32>
    %71 = vector.extract_strided_slice %62 {offsets = [0, 64], sizes = [8, 32], strides = [1, 1]} : vector<8x128xf32> to vector<8x32xf32>
    %72 = math.tanh %71 : vector<8x32xf32>
    %73 = arith.mulf %69, %34 : vector<8x32xf32>
    %74 = arith.mulf %68, %72 : vector<8x32xf32>
    %75 = arith.addf %73, %74 : vector<8x32xf32>
    %76 = math.tanh %75 : vector<8x32xf32>
    %77 = arith.mulf %70, %76 : vector<8x32xf32>
    %cst_27 = arith.constant dense<0.000000e+00> : vector<8x128xf32>
    %78 = tpu.matmul %77, %13, %cst_27 {dimension_numbers = #tpu.dot_dimension_numbers<[1], [0], [0], [1], [0, 0, 1, 1], [], []>} : vector<8x32xf32>, vector<32x128xf32>, vector<8x128xf32> -> vector<8x128xf32>
    %79 = vector.broadcast %14 : vector<1x128xf32> to vector<8x128xf32>
    %80 = arith.addf %78, %79 : vector<8x128xf32>
    %cst_28 = arith.constant dense<0.000000e+00> : vector<8x128xf32>
    %81 = tpu.matmul %56, %12, %cst_28 {dimension_numbers = #tpu.dot_dimension_numbers<[1], [0], [0], [1], [0, 0, 1, 1], [], []>} : vector<8x32xf32>, vector<32x128xf32>, vector<8x128xf32> -> vector<8x128xf32>
    %82 = arith.addf %80, %81 : vector<8x128xf32>
    %83 = arith.negf %82 : vector<8x128xf32>
    %84 = math.exp %83 : vector<8x128xf32>
    %cst_29 = arith.constant 1.000000e+00 : f32
    %85 = vector.broadcast %cst_29 : f32 to vector<8x128xf32>
    %86 = arith.addf %85, %84 : vector<8x128xf32>
    %87 = arith.divf %85, %86 : vector<8x128xf32>
    %88 = vector.extract_strided_slice %87 {offsets = [0, 0], sizes = [8, 32], strides = [1, 1]} : vector<8x128xf32> to vector<8x32xf32>
    %89 = vector.extract_strided_slice %87 {offsets = [0, 32], sizes = [8, 32], strides = [1, 1]} : vector<8x128xf32> to vector<8x32xf32>
    %90 = vector.extract_strided_slice %87 {offsets = [0, 96], sizes = [8, 32], strides = [1, 1]} : vector<8x128xf32> to vector<8x32xf32>
    %91 = vector.extract_strided_slice %82 {offsets = [0, 64], sizes = [8, 32], strides = [1, 1]} : vector<8x128xf32> to vector<8x32xf32>
    %92 = math.tanh %91 : vector<8x32xf32>
    %93 = arith.mulf %89, %54 : vector<8x32xf32>
    %94 = arith.mulf %88, %92 : vector<8x32xf32>
    %95 = arith.addf %93, %94 : vector<8x32xf32>
    %96 = math.tanh %95 : vector<8x32xf32>
    %97 = arith.mulf %90, %96 : vector<8x32xf32>
    %c1 = arith.constant 1 : index
    %c0_30 = arith.constant 0 : index
    %c0_31 = arith.constant 0 : index
    %98 = vector.load %arg10[%c1, %c0_30, %c0_31] : memref<8x8x32xf32, #tpu.memory_space<vmem>>, vector<1x8x32xf32>
    %99 = vector.shape_cast %98 : vector<1x8x32xf32> to vector<8x32xf32>
    %100 = vector.shape_cast %97 : vector<8x32xf32> to vector<1x8x32xf32>
    tpu.vector_store %arg10[%c1, %c0_30, %c0_31], %100 {strides = array<i32>} : memref<8x8x32xf32, #tpu.memory_space<vmem>>, vector<1x8x32xf32>,
    %101 = vector.extract_strided_slice %10 {offsets = [16, 0], sizes = [8, 128], strides = [1, 1]} : vector<64x128xf32> to vector<8x128xf32>
    %cst_32 = arith.constant dense<0.000000e+00> : vector<8x128xf32>
    %102 = tpu.matmul %77, %11, %cst_32 {dimension_numbers = #tpu.dot_dimension_numbers<[1], [0], [0], [1], [0, 0, 1, 1], [], []>} : vector<8x32xf32>, vector<32x128xf32>, vector<8x128xf32> -> vector<8x128xf32>
    %103 = arith.addf %101, %102 : vector<8x128xf32>
    %104 = arith.negf %103 : vector<8x128xf32>
    %105 = math.exp %104 : vector<8x128xf32>
    %cst_33 = arith.constant 1.000000e+00 : f32
    %106 = vector.broadcast %cst_33 : f32 to vector<8x128xf32>
    %107 = arith.addf %106, %105 : vector<8x128xf32>
    %108 = arith.divf %106, %107 : vector<8x128xf32>
    %109 = vector.extract_strided_slice %108 {offsets = [0, 0], sizes = [8, 32], strides = [1, 1]} : vector<8x128xf32> to vector<8x32xf32>
    %110 = vector.extract_strided_slice %108 {offsets = [0, 32], sizes = [8, 32], strides = [1, 1]} : vector<8x128xf32> to vector<8x32xf32>
    %111 = vector.extract_strided_slice %108 {offsets = [0, 96], sizes = [8, 32], strides = [1, 1]} : vector<8x128xf32> to vector<8x32xf32>
    %112 = vector.extract_strided_slice %103 {offsets = [0, 64], sizes = [8, 32], strides = [1, 1]} : vector<8x128xf32> to vector<8x32xf32>
    %113 = math.tanh %112 : vector<8x32xf32>
    %114 = arith.mulf %110, %75 : vector<8x32xf32>
    %115 = arith.mulf %109, %113 : vector<8x32xf32>
    %116 = arith.addf %114, %115 : vector<8x32xf32>
    %117 = math.tanh %116 : vector<8x32xf32>
    %118 = arith.mulf %111, %117 : vector<8x32xf32>
    %cst_34 = arith.constant dense<0.000000e+00> : vector<8x128xf32>
    %119 = tpu.matmul %118, %13, %cst_34 {dimension_numbers = #tpu.dot_dimension_numbers<[1], [0], [0], [1], [0, 0, 1, 1], [], []>} : vector<8x32xf32>, vector<32x128xf32>, vector<8x128xf32> -> vector<8x128xf32>
    %120 = vector.broadcast %14 : vector<1x128xf32> to vector<8x128xf32>
    %121 = arith.addf %119, %120 : vector<8x128xf32>
    %cst_35 = arith.constant dense<0.000000e+00> : vector<8x128xf32>
    %122 = tpu.matmul %97, %12, %cst_35 {dimension_numbers = #tpu.dot_dimension_numbers<[1], [0], [0], [1], [0, 0, 1, 1], [], []>} : vector<8x32xf32>, vector<32x128xf32>, vector<8x128xf32> -> vector<8x128xf32>
    %123 = arith.addf %121, %122 : vector<8x128xf32>
    %124 = arith.negf %123 : vector<8x128xf32>
    %125 = math.exp %124 : vector<8x128xf32>
    %cst_36 = arith.constant 1.000000e+00 : f32
    %126 = vector.broadcast %cst_36 : f32 to vector<8x128xf32>
    %127 = arith.addf %126, %125 : vector<8x128xf32>
    %128 = arith.divf %126, %127 : vector<8x128xf32>
    %129 = vector.extract_strided_slice %128 {offsets = [0, 0], sizes = [8, 32], strides = [1, 1]} : vector<8x128xf32> to vector<8x32xf32>
    %130 = vector.extract_strided_slice %128 {offsets = [0, 32], sizes = [8, 32], strides = [1, 1]} : vector<8x128xf32> to vector<8x32xf32>
    %131 = vector.extract_strided_slice %128 {offsets = [0, 96], sizes = [8, 32], strides = [1, 1]} : vector<8x128xf32> to vector<8x32xf32>
    %132 = vector.extract_strided_slice %123 {offsets = [0, 64], sizes = [8, 32], strides = [1, 1]} : vector<8x128xf32> to vector<8x32xf32>
    %133 = math.tanh %132 : vector<8x32xf32>
    %134 = arith.mulf %130, %95 : vector<8x32xf32>
    %135 = arith.mulf %129, %133 : vector<8x32xf32>
    %136 = arith.addf %134, %135 : vector<8x32xf32>
    %137 = math.tanh %136 : vector<8x32xf32>
    %138 = arith.mulf %131, %137 : vector<8x32xf32>
    %c2 = arith.constant 2 : index
    %c0_37 = arith.constant 0 : index
    %c0_38 = arith.constant 0 : index
    %139 = vector.load %arg10[%c2, %c0_37, %c0_38] : memref<8x8x32xf32, #tpu.memory_space<vmem>>, vector<1x8x32xf32>
    %140 = vector.shape_cast %139 : vector<1x8x32xf32> to vector<8x32xf32>
    %141 = vector.shape_cast %138 : vector<8x32xf32> to vector<1x8x32xf32>
    tpu.vector_store %arg10[%c2, %c0_37, %c0_38], %141 {strides = array<i32>} : memref<8x8x32xf32, #tpu.memory_space<vmem>>, vector<1x8x32xf32>,
    %142 = vector.extract_strided_slice %10 {offsets = [24, 0], sizes = [8, 128], strides = [1, 1]} : vector<64x128xf32> to vector<8x128xf32>
    %cst_39 = arith.constant dense<0.000000e+00> : vector<8x128xf32>
    %143 = tpu.matmul %118, %11, %cst_39 {dimension_numbers = #tpu.dot_dimension_numbers<[1], [0], [0], [1], [0, 0, 1, 1], [], []>} : vector<8x32xf32>, vector<32x128xf32>, vector<8x128xf32> -> vector<8x128xf32>
    %144 = arith.addf %142, %143 : vector<8x128xf32>
    %145 = arith.negf %144 : vector<8x128xf32>
    %146 = math.exp %145 : vector<8x128xf32>
    %cst_40 = arith.constant 1.000000e+00 : f32
    %147 = vector.broadcast %cst_40 : f32 to vector<8x128xf32>
    %148 = arith.addf %147, %146 : vector<8x128xf32>
    %149 = arith.divf %147, %148 : vector<8x128xf32>
    %150 = vector.extract_strided_slice %149 {offsets = [0, 0], sizes = [8, 32], strides = [1, 1]} : vector<8x128xf32> to vector<8x32xf32>
    %151 = vector.extract_strided_slice %149 {offsets = [0, 32], sizes = [8, 32], strides = [1, 1]} : vector<8x128xf32> to vector<8x32xf32>
    %152 = vector.extract_strided_slice %149 {offsets = [0, 96], sizes = [8, 32], strides = [1, 1]} : vector<8x128xf32> to vector<8x32xf32>
    %153 = vector.extract_strided_slice %144 {offsets = [0, 64], sizes = [8, 32], strides = [1, 1]} : vector<8x128xf32> to vector<8x32xf32>
    %154 = math.tanh %153 : vector<8x32xf32>
    %155 = arith.mulf %151, %116 : vector<8x32xf32>
    %156 = arith.mulf %150, %154 : vector<8x32xf32>
    %157 = arith.addf %155, %156 : vector<8x32xf32>
    %158 = math.tanh %157 : vector<8x32xf32>
    %159 = arith.mulf %152, %158 : vector<8x32xf32>
    %cst_41 = arith.constant dense<0.000000e+00> : vector<8x128xf32>
    %160 = tpu.matmul %159, %13, %cst_41 {dimension_numbers = #tpu.dot_dimension_numbers<[1], [0], [0], [1], [0, 0, 1, 1], [], []>} : vector<8x32xf32>, vector<32x128xf32>, vector<8x128xf32> -> vector<8x128xf32>
    %161 = vector.broadcast %14 : vector<1x128xf32> to vector<8x128xf32>
    %162 = arith.addf %160, %161 : vector<8x128xf32>
    %cst_42 = arith.constant dense<0.000000e+00> : vector<8x128xf32>
    %163 = tpu.matmul %138, %12, %cst_42 {dimension_numbers = #tpu.dot_dimension_numbers<[1], [0], [0], [1], [0, 0, 1, 1], [], []>} : vector<8x32xf32>, vector<32x128xf32>, vector<8x128xf32> -> vector<8x128xf32>
    %164 = arith.addf %162, %163 : vector<8x128xf32>
    %165 = arith.negf %164 : vector<8x128xf32>
    %166 = math.exp %165 : vector<8x128xf32>
    %cst_43 = arith.constant 1.000000e+00 : f32
    %167 = vector.broadcast %cst_43 : f32 to vector<8x128xf32>
    %168 = arith.addf %167, %166 : vector<8x128xf32>
    %169 = arith.divf %167, %168 : vector<8x128xf32>
    %170 = vector.extract_strided_slice %169 {offsets = [0, 0], sizes = [8, 32], strides = [1, 1]} : vector<8x128xf32> to vector<8x32xf32>
    %171 = vector.extract_strided_slice %169 {offsets = [0, 32], sizes = [8, 32], strides = [1, 1]} : vector<8x128xf32> to vector<8x32xf32>
    %172 = vector.extract_strided_slice %169 {offsets = [0, 96], sizes = [8, 32], strides = [1, 1]} : vector<8x128xf32> to vector<8x32xf32>
    %173 = vector.extract_strided_slice %164 {offsets = [0, 64], sizes = [8, 32], strides = [1, 1]} : vector<8x128xf32> to vector<8x32xf32>
    %174 = math.tanh %173 : vector<8x32xf32>
    %175 = arith.mulf %171, %136 : vector<8x32xf32>
    %176 = arith.mulf %170, %174 : vector<8x32xf32>
    %177 = arith.addf %175, %176 : vector<8x32xf32>
    %178 = math.tanh %177 : vector<8x32xf32>
    %179 = arith.mulf %172, %178 : vector<8x32xf32>
    %c3 = arith.constant 3 : index
    %c0_44 = arith.constant 0 : index
    %c0_45 = arith.constant 0 : index
    %180 = vector.load %arg10[%c3, %c0_44, %c0_45] : memref<8x8x32xf32, #tpu.memory_space<vmem>>, vector<1x8x32xf32>
    %181 = vector.shape_cast %180 : vector<1x8x32xf32> to vector<8x32xf32>
    %182 = vector.shape_cast %179 : vector<8x32xf32> to vector<1x8x32xf32>
    tpu.vector_store %arg10[%c3, %c0_44, %c0_45], %182 {strides = array<i32>} : memref<8x8x32xf32, #tpu.memory_space<vmem>>, vector<1x8x32xf32>,
    %183 = vector.extract_strided_slice %10 {offsets = [32, 0], sizes = [8, 128], strides = [1, 1]} : vector<64x128xf32> to vector<8x128xf32>
    %cst_46 = arith.constant dense<0.000000e+00> : vector<8x128xf32>
    %184 = tpu.matmul %159, %11, %cst_46 {dimension_numbers = #tpu.dot_dimension_numbers<[1], [0], [0], [1], [0, 0, 1, 1], [], []>} : vector<8x32xf32>, vector<32x128xf32>, vector<8x128xf32> -> vector<8x128xf32>
    %185 = arith.addf %183, %184 : vector<8x128xf32>
    %186 = arith.negf %185 : vector<8x128xf32>
    %187 = math.exp %186 : vector<8x128xf32>
    %cst_47 = arith.constant 1.000000e+00 : f32
    %188 = vector.broadcast %cst_47 : f32 to vector<8x128xf32>
    %189 = arith.addf %188, %187 : vector<8x128xf32>
    %190 = arith.divf %188, %189 : vector<8x128xf32>
    %191 = vector.extract_strided_slice %190 {offsets = [0, 0], sizes = [8, 32], strides = [1, 1]} : vector<8x128xf32> to vector<8x32xf32>
    %192 = vector.extract_strided_slice %190 {offsets = [0, 32], sizes = [8, 32], strides = [1, 1]} : vector<8x128xf32> to vector<8x32xf32>
    %193 = vector.extract_strided_slice %190 {offsets = [0, 96], sizes = [8, 32], strides = [1, 1]} : vector<8x128xf32> to vector<8x32xf32>
    %194 = vector.extract_strided_slice %185 {offsets = [0, 64], sizes = [8, 32], strides = [1, 1]} : vector<8x128xf32> to vector<8x32xf32>
    %195 = math.tanh %194 : vector<8x32xf32>
    %196 = arith.mulf %192, %157 : vector<8x32xf32>
    %197 = arith.mulf %191, %195 : vector<8x32xf32>
    %198 = arith.addf %196, %197 : vector<8x32xf32>
    %199 = math.tanh %198 : vector<8x32xf32>
    %200 = arith.mulf %193, %199 : vector<8x32xf32>
    %cst_48 = arith.constant dense<0.000000e+00> : vector<8x128xf32>
    %201 = tpu.matmul %200, %13, %cst_48 {dimension_numbers = #tpu.dot_dimension_numbers<[1], [0], [0], [1], [0, 0, 1, 1], [], []>} : vector<8x32xf32>, vector<32x128xf32>, vector<8x128xf32> -> vector<8x128xf32>
    %202 = vector.broadcast %14 : vector<1x128xf32> to vector<8x128xf32>
    %203 = arith.addf %201, %202 : vector<8x128xf32>
    %cst_49 = arith.constant dense<0.000000e+00> : vector<8x128xf32>
    %204 = tpu.matmul %179, %12, %cst_49 {dimension_numbers = #tpu.dot_dimension_numbers<[1], [0], [0], [1], [0, 0, 1, 1], [], []>} : vector<8x32xf32>, vector<32x128xf32>, vector<8x128xf32> -> vector<8x128xf32>
    %205 = arith.addf %203, %204 : vector<8x128xf32>
    %206 = arith.negf %205 : vector<8x128xf32>
    %207 = math.exp %206 : vector<8x128xf32>
    %cst_50 = arith.constant 1.000000e+00 : f32
    %208 = vector.broadcast %cst_50 : f32 to vector<8x128xf32>
    %209 = arith.addf %208, %207 : vector<8x128xf32>
    %210 = arith.divf %208, %209 : vector<8x128xf32>
    %211 = vector.extract_strided_slice %210 {offsets = [0, 0], sizes = [8, 32], strides = [1, 1]} : vector<8x128xf32> to vector<8x32xf32>
    %212 = vector.extract_strided_slice %210 {offsets = [0, 32], sizes = [8, 32], strides = [1, 1]} : vector<8x128xf32> to vector<8x32xf32>
    %213 = vector.extract_strided_slice %210 {offsets = [0, 96], sizes = [8, 32], strides = [1, 1]} : vector<8x128xf32> to vector<8x32xf32>
    %214 = vector.extract_strided_slice %205 {offsets = [0, 64], sizes = [8, 32], strides = [1, 1]} : vector<8x128xf32> to vector<8x32xf32>
    %215 = math.tanh %214 : vector<8x32xf32>
    %216 = arith.mulf %212, %177 : vector<8x32xf32>
    %217 = arith.mulf %211, %215 : vector<8x32xf32>
    %218 = arith.addf %216, %217 : vector<8x32xf32>
    %219 = math.tanh %218 : vector<8x32xf32>
    %220 = arith.mulf %213, %219 : vector<8x32xf32>
    %c4 = arith.constant 4 : index
    %c0_51 = arith.constant 0 : index
    %c0_52 = arith.constant 0 : index
    %221 = vector.load %arg10[%c4, %c0_51, %c0_52] : memref<8x8x32xf32, #tpu.memory_space<vmem>>, vector<1x8x32xf32>
    %222 = vector.shape_cast %221 : vector<1x8x32xf32> to vector<8x32xf32>
    %223 = vector.shape_cast %220 : vector<8x32xf32> to vector<1x8x32xf32>
    tpu.vector_store %arg10[%c4, %c0_51, %c0_52], %223 {strides = array<i32>} : memref<8x8x32xf32, #tpu.memory_space<vmem>>, vector<1x8x32xf32>,
    %224 = vector.extract_strided_slice %10 {offsets = [40, 0], sizes = [8, 128], strides = [1, 1]} : vector<64x128xf32> to vector<8x128xf32>
    %cst_53 = arith.constant dense<0.000000e+00> : vector<8x128xf32>
    %225 = tpu.matmul %200, %11, %cst_53 {dimension_numbers = #tpu.dot_dimension_numbers<[1], [0], [0], [1], [0, 0, 1, 1], [], []>} : vector<8x32xf32>, vector<32x128xf32>, vector<8x128xf32> -> vector<8x128xf32>
    %226 = arith.addf %224, %225 : vector<8x128xf32>
    %227 = arith.negf %226 : vector<8x128xf32>
    %228 = math.exp %227 : vector<8x128xf32>
    %cst_54 = arith.constant 1.000000e+00 : f32
    %229 = vector.broadcast %cst_54 : f32 to vector<8x128xf32>
    %230 = arith.addf %229, %228 : vector<8x128xf32>
    %231 = arith.divf %229, %230 : vector<8x128xf32>
    %232 = vector.extract_strided_slice %231 {offsets = [0, 0], sizes = [8, 32], strides = [1, 1]} : vector<8x128xf32> to vector<8x32xf32>
    %233 = vector.extract_strided_slice %231 {offsets = [0, 32], sizes = [8, 32], strides = [1, 1]} : vector<8x128xf32> to vector<8x32xf32>
    %234 = vector.extract_strided_slice %231 {offsets = [0, 96], sizes = [8, 32], strides = [1, 1]} : vector<8x128xf32> to vector<8x32xf32>
    %235 = vector.extract_strided_slice %226 {offsets = [0, 64], sizes = [8, 32], strides = [1, 1]} : vector<8x128xf32> to vector<8x32xf32>
    %236 = math.tanh %235 : vector<8x32xf32>
    %237 = arith.mulf %233, %198 : vector<8x32xf32>
    %238 = arith.mulf %232, %236 : vector<8x32xf32>
    %239 = arith.addf %237, %238 : vector<8x32xf32>
    %240 = math.tanh %239 : vector<8x32xf32>
    %241 = arith.mulf %234, %240 : vector<8x32xf32>
    %cst_55 = arith.constant dense<0.000000e+00> : vector<8x128xf32>
    %242 = tpu.matmul %241, %13, %cst_55 {dimension_numbers = #tpu.dot_dimension_numbers<[1], [0], [0], [1], [0, 0, 1, 1], [], []>} : vector<8x32xf32>, vector<32x128xf32>, vector<8x128xf32> -> vector<8x128xf32>
    %243 = vector.broadcast %14 : vector<1x128xf32> to vector<8x128xf32>
    %244 = arith.addf %242, %243 : vector<8x128xf32>
    %cst_56 = arith.constant dense<0.000000e+00> : vector<8x128xf32>
    %245 = tpu.matmul %220, %12, %cst_56 {dimension_numbers = #tpu.dot_dimension_numbers<[1], [0], [0], [1], [0, 0, 1, 1], [], []>} : vector<8x32xf32>, vector<32x128xf32>, vector<8x128xf32> -> vector<8x128xf32>
    %246 = arith.addf %244, %245 : vector<8x128xf32>
    %247 = arith.negf %246 : vector<8x128xf32>
    %248 = math.exp %247 : vector<8x128xf32>
    %cst_57 = arith.constant 1.000000e+00 : f32
    %249 = vector.broadcast %cst_57 : f32 to vector<8x128xf32>
    %250 = arith.addf %249, %248 : vector<8x128xf32>
    %251 = arith.divf %249, %250 : vector<8x128xf32>
    %252 = vector.extract_strided_slice %251 {offsets = [0, 0], sizes = [8, 32], strides = [1, 1]} : vector<8x128xf32> to vector<8x32xf32>
    %253 = vector.extract_strided_slice %251 {offsets = [0, 32], sizes = [8, 32], strides = [1, 1]} : vector<8x128xf32> to vector<8x32xf32>
    %254 = vector.extract_strided_slice %251 {offsets = [0, 96], sizes = [8, 32], strides = [1, 1]} : vector<8x128xf32> to vector<8x32xf32>
    %255 = vector.extract_strided_slice %246 {offsets = [0, 64], sizes = [8, 32], strides = [1, 1]} : vector<8x128xf32> to vector<8x32xf32>
    %256 = math.tanh %255 : vector<8x32xf32>
    %257 = arith.mulf %253, %218 : vector<8x32xf32>
    %258 = arith.mulf %252, %256 : vector<8x32xf32>
    %259 = arith.addf %257, %258 : vector<8x32xf32>
    %260 = math.tanh %259 : vector<8x32xf32>
    %261 = arith.mulf %254, %260 : vector<8x32xf32>
    %c5 = arith.constant 5 : index
    %c0_58 = arith.constant 0 : index
    %c0_59 = arith.constant 0 : index
    %262 = vector.load %arg10[%c5, %c0_58, %c0_59] : memref<8x8x32xf32, #tpu.memory_space<vmem>>, vector<1x8x32xf32>
    %263 = vector.shape_cast %262 : vector<1x8x32xf32> to vector<8x32xf32>
    %264 = vector.shape_cast %261 : vector<8x32xf32> to vector<1x8x32xf32>
    tpu.vector_store %arg10[%c5, %c0_58, %c0_59], %264 {strides = array<i32>} : memref<8x8x32xf32, #tpu.memory_space<vmem>>, vector<1x8x32xf32>,
    %265 = vector.extract_strided_slice %10 {offsets = [48, 0], sizes = [8, 128], strides = [1, 1]} : vector<64x128xf32> to vector<8x128xf32>
    %cst_60 = arith.constant dense<0.000000e+00> : vector<8x128xf32>
    %266 = tpu.matmul %241, %11, %cst_60 {dimension_numbers = #tpu.dot_dimension_numbers<[1], [0], [0], [1], [0, 0, 1, 1], [], []>} : vector<8x32xf32>, vector<32x128xf32>, vector<8x128xf32> -> vector<8x128xf32>
    %267 = arith.addf %265, %266 : vector<8x128xf32>
    %268 = arith.negf %267 : vector<8x128xf32>
    %269 = math.exp %268 : vector<8x128xf32>
    %cst_61 = arith.constant 1.000000e+00 : f32
    %270 = vector.broadcast %cst_61 : f32 to vector<8x128xf32>
    %271 = arith.addf %270, %269 : vector<8x128xf32>
    %272 = arith.divf %270, %271 : vector<8x128xf32>
    %273 = vector.extract_strided_slice %272 {offsets = [0, 0], sizes = [8, 32], strides = [1, 1]} : vector<8x128xf32> to vector<8x32xf32>
    %274 = vector.extract_strided_slice %272 {offsets = [0, 32], sizes = [8, 32], strides = [1, 1]} : vector<8x128xf32> to vector<8x32xf32>
    %275 = vector.extract_strided_slice %272 {offsets = [0, 96], sizes = [8, 32], strides = [1, 1]} : vector<8x128xf32> to vector<8x32xf32>
    %276 = vector.extract_strided_slice %267 {offsets = [0, 64], sizes = [8, 32], strides = [1, 1]} : vector<8x128xf32> to vector<8x32xf32>
    %277 = math.tanh %276 : vector<8x32xf32>
    %278 = arith.mulf %274, %239 : vector<8x32xf32>
    %279 = arith.mulf %273, %277 : vector<8x32xf32>
    %280 = arith.addf %278, %279 : vector<8x32xf32>
    %281 = math.tanh %280 : vector<8x32xf32>
    %282 = arith.mulf %275, %281 : vector<8x32xf32>
    %cst_62 = arith.constant dense<0.000000e+00> : vector<8x128xf32>
    %283 = tpu.matmul %282, %13, %cst_62 {dimension_numbers = #tpu.dot_dimension_numbers<[1], [0], [0], [1], [0, 0, 1, 1], [], []>} : vector<8x32xf32>, vector<32x128xf32>, vector<8x128xf32> -> vector<8x128xf32>
    %284 = vector.broadcast %14 : vector<1x128xf32> to vector<8x128xf32>
    %285 = arith.addf %283, %284 : vector<8x128xf32>
    %cst_63 = arith.constant dense<0.000000e+00> : vector<8x128xf32>
    %286 = tpu.matmul %261, %12, %cst_63 {dimension_numbers = #tpu.dot_dimension_numbers<[1], [0], [0], [1], [0, 0, 1, 1], [], []>} : vector<8x32xf32>, vector<32x128xf32>, vector<8x128xf32> -> vector<8x128xf32>
    %287 = arith.addf %285, %286 : vector<8x128xf32>
    %288 = arith.negf %287 : vector<8x128xf32>
    %289 = math.exp %288 : vector<8x128xf32>
    %cst_64 = arith.constant 1.000000e+00 : f32
    %290 = vector.broadcast %cst_64 : f32 to vector<8x128xf32>
    %291 = arith.addf %290, %289 : vector<8x128xf32>
    %292 = arith.divf %290, %291 : vector<8x128xf32>
    %293 = vector.extract_strided_slice %292 {offsets = [0, 0], sizes = [8, 32], strides = [1, 1]} : vector<8x128xf32> to vector<8x32xf32>
    %294 = vector.extract_strided_slice %292 {offsets = [0, 32], sizes = [8, 32], strides = [1, 1]} : vector<8x128xf32> to vector<8x32xf32>
    %295 = vector.extract_strided_slice %292 {offsets = [0, 96], sizes = [8, 32], strides = [1, 1]} : vector<8x128xf32> to vector<8x32xf32>
    %296 = vector.extract_strided_slice %287 {offsets = [0, 64], sizes = [8, 32], strides = [1, 1]} : vector<8x128xf32> to vector<8x32xf32>
    %297 = math.tanh %296 : vector<8x32xf32>
    %298 = arith.mulf %294, %259 : vector<8x32xf32>
    %299 = arith.mulf %293, %297 : vector<8x32xf32>
    %300 = arith.addf %298, %299 : vector<8x32xf32>
    %301 = math.tanh %300 : vector<8x32xf32>
    %302 = arith.mulf %295, %301 : vector<8x32xf32>
    %c6 = arith.constant 6 : index
    %c0_65 = arith.constant 0 : index
    %c0_66 = arith.constant 0 : index
    %303 = vector.load %arg10[%c6, %c0_65, %c0_66] : memref<8x8x32xf32, #tpu.memory_space<vmem>>, vector<1x8x32xf32>
    %304 = vector.shape_cast %303 : vector<1x8x32xf32> to vector<8x32xf32>
    %305 = vector.shape_cast %302 : vector<8x32xf32> to vector<1x8x32xf32>
    tpu.vector_store %arg10[%c6, %c0_65, %c0_66], %305 {strides = array<i32>} : memref<8x8x32xf32, #tpu.memory_space<vmem>>, vector<1x8x32xf32>,
    %306 = vector.extract_strided_slice %10 {offsets = [56, 0], sizes = [8, 128], strides = [1, 1]} : vector<64x128xf32> to vector<8x128xf32>
    %cst_67 = arith.constant dense<0.000000e+00> : vector<8x128xf32>
    %307 = tpu.matmul %282, %11, %cst_67 {dimension_numbers = #tpu.dot_dimension_numbers<[1], [0], [0], [1], [0, 0, 1, 1], [], []>} : vector<8x32xf32>, vector<32x128xf32>, vector<8x128xf32> -> vector<8x128xf32>
    %308 = arith.addf %306, %307 : vector<8x128xf32>
    %309 = arith.negf %308 : vector<8x128xf32>
    %310 = math.exp %309 : vector<8x128xf32>
    %cst_68 = arith.constant 1.000000e+00 : f32
    %311 = vector.broadcast %cst_68 : f32 to vector<8x128xf32>
    %312 = arith.addf %311, %310 : vector<8x128xf32>
    %313 = arith.divf %311, %312 : vector<8x128xf32>
    %314 = vector.extract_strided_slice %313 {offsets = [0, 0], sizes = [8, 32], strides = [1, 1]} : vector<8x128xf32> to vector<8x32xf32>
    %315 = vector.extract_strided_slice %313 {offsets = [0, 32], sizes = [8, 32], strides = [1, 1]} : vector<8x128xf32> to vector<8x32xf32>
    %316 = vector.extract_strided_slice %313 {offsets = [0, 96], sizes = [8, 32], strides = [1, 1]} : vector<8x128xf32> to vector<8x32xf32>
    %317 = vector.extract_strided_slice %308 {offsets = [0, 64], sizes = [8, 32], strides = [1, 1]} : vector<8x128xf32> to vector<8x32xf32>
    %318 = math.tanh %317 : vector<8x32xf32>
    %319 = arith.mulf %315, %280 : vector<8x32xf32>
    %320 = arith.mulf %314, %318 : vector<8x32xf32>
    %321 = arith.addf %319, %320 : vector<8x32xf32>
    %322 = math.tanh %321 : vector<8x32xf32>
    %323 = arith.mulf %316, %322 : vector<8x32xf32>
    %cst_69 = arith.constant dense<0.000000e+00> : vector<8x128xf32>
    %324 = tpu.matmul %323, %13, %cst_69 {dimension_numbers = #tpu.dot_dimension_numbers<[1], [0], [0], [1], [0, 0, 1, 1], [], []>} : vector<8x32xf32>, vector<32x128xf32>, vector<8x128xf32> -> vector<8x128xf32>
    %325 = vector.broadcast %14 : vector<1x128xf32> to vector<8x128xf32>
    %326 = arith.addf %324, %325 : vector<8x128xf32>
    %cst_70 = arith.constant dense<0.000000e+00> : vector<8x128xf32>
    %327 = tpu.matmul %302, %12, %cst_70 {dimension_numbers = #tpu.dot_dimension_numbers<[1], [0], [0], [1], [0, 0, 1, 1], [], []>} : vector<8x32xf32>, vector<32x128xf32>, vector<8x128xf32> -> vector<8x128xf32>
    %328 = arith.addf %326, %327 : vector<8x128xf32>
    %329 = arith.negf %328 : vector<8x128xf32>
    %330 = math.exp %329 : vector<8x128xf32>
    %cst_71 = arith.constant 1.000000e+00 : f32
    %331 = vector.broadcast %cst_71 : f32 to vector<8x128xf32>
    %332 = arith.addf %331, %330 : vector<8x128xf32>
    %333 = arith.divf %331, %332 : vector<8x128xf32>
    %334 = vector.extract_strided_slice %333 {offsets = [0, 0], sizes = [8, 32], strides = [1, 1]} : vector<8x128xf32> to vector<8x32xf32>
    %335 = vector.extract_strided_slice %333 {offsets = [0, 32], sizes = [8, 32], strides = [1, 1]} : vector<8x128xf32> to vector<8x32xf32>
    %336 = vector.extract_strided_slice %333 {offsets = [0, 96], sizes = [8, 32], strides = [1, 1]} : vector<8x128xf32> to vector<8x32xf32>
    %337 = vector.extract_strided_slice %328 {offsets = [0, 64], sizes = [8, 32], strides = [1, 1]} : vector<8x128xf32> to vector<8x32xf32>
    %338 = math.tanh %337 : vector<8x32xf32>
    %339 = arith.mulf %335, %300 : vector<8x32xf32>
    %340 = arith.mulf %334, %338 : vector<8x32xf32>
    %341 = arith.addf %339, %340 : vector<8x32xf32>
    %342 = math.tanh %341 : vector<8x32xf32>
    %343 = arith.mulf %336, %342 : vector<8x32xf32>
    %c7 = arith.constant 7 : index
    %c0_72 = arith.constant 0 : index
    %c0_73 = arith.constant 0 : index
    %344 = vector.load %arg10[%c7, %c0_72, %c0_73] : memref<8x8x32xf32, #tpu.memory_space<vmem>>, vector<1x8x32xf32>
    %345 = vector.shape_cast %344 : vector<1x8x32xf32> to vector<8x32xf32>
    %346 = vector.shape_cast %343 : vector<8x32xf32> to vector<1x8x32xf32>
    tpu.vector_store %arg10[%c7, %c0_72, %c0_73], %346 {strides = array<i32>} : memref<8x8x32xf32, #tpu.memory_space<vmem>>, vector<1x8x32xf32>,
    %c0_74 = arith.constant 0 : index
    %c0_75 = arith.constant 0 : index
    %c0_76 = arith.constant 0 : index
    %347 = vector.load %arg10[%c0_74, %c0_75, %c0_76] : memref<8x8x32xf32, #tpu.memory_space<vmem>>, vector<8x8x32xf32>
    %348 = vector.shape_cast %343 : vector<8x32xf32> to vector<1x8x32xf32>
    %349 = vector.broadcast %348 : vector<1x8x32xf32> to vector<8x8x32xf32>
    %350 = arith.mulf %347, %349 : vector<8x8x32xf32>
    %cst_77 = arith.constant dense<0.000000e+00> : vector<8x8xf32>
    %351 = vector.multi_reduction <add>, %350, %cst_77 [2] : vector<8x8x32xf32> to vector<8x8xf32>
    %352 = vector.shape_cast %351 : vector<8x8xf32> to vector<8x8x1xf32>
    %cst_78 = arith.constant dense<0xFF800000> : vector<8x1xf32>
    %353 = vector.multi_reduction <maximumf>, %352, %cst_78 [0] : vector<8x8x1xf32> to vector<8x1xf32>
    %354 = vector.shape_cast %353 : vector<8x1xf32> to vector<1x8x1xf32>
    %355 = vector.broadcast %354 : vector<1x8x1xf32> to vector<8x8x1xf32>
    %356 = arith.subf %352, %355 : vector<8x8x1xf32>
    %357 = math.exp %356 : vector<8x8x1xf32>
    %cst_79 = arith.constant dense<0.000000e+00> : vector<8x1xf32>
    %358 = vector.multi_reduction <add>, %357, %cst_79 [0] : vector<8x8x1xf32> to vector<8x1xf32>
    %359 = vector.shape_cast %358 : vector<8x1xf32> to vector<1x8x1xf32>
    %360 = tpu.reciprocal %359 {approx = true} : vector<1x8x1xf32> -> vector<1x8x1xf32>
    %361 = vector.broadcast %360 : vector<1x8x1xf32> to vector<8x8x1xf32>
    %362 = arith.mulf %357, %361 : vector<8x8x1xf32>
    %363 = vector.broadcast %362 : vector<8x8x1xf32> to vector<8x8x32xf32>
    %364 = arith.mulf %347, %363 : vector<8x8x32xf32>
    %cst_80 = arith.constant dense<0.000000e+00> : vector<8x32xf32>
    %365 = vector.multi_reduction <add>, %364, %cst_80 [0] : vector<8x8x32xf32> to vector<8x32xf32>
    %c0_81 = arith.constant 0 : index
    %c0_82 = arith.constant 0 : index
    %366 = vector.load %arg7[%c0_81, %c0_82] : memref<1x32xf32, #tpu.memory_space<vmem>>, vector<1x32xf32>
    %367 = vector.broadcast %366 : vector<1x32xf32> to vector<8x32xf32>
    %368 = arith.mulf %365, %367 : vector<8x32xf32>
    %cst_83 = arith.constant dense<0.000000e+00> : vector<8xf32>
    %369 = vector.multi_reduction <add>, %368, %cst_83 [1] : vector<8x32xf32> to vector<8xf32>
    %370 = vector.shape_cast %369 : vector<8xf32> to vector<8x1xf32>
    %c0_84 = arith.constant 0 : index
    %c0_85 = arith.constant 0 : index
    %371 = vector.load %arg8[%c0_84, %c0_85] : memref<1x1xf32, #tpu.memory_space<vmem>>, vector<1x1xf32>
    %372 = vector.broadcast %371 : vector<1x1xf32> to vector<8x1xf32>
    %373 = arith.addf %370, %372 : vector<8x1xf32>
    %374 = arith.negf %373 : vector<8x1xf32>
    %375 = math.exp %374 : vector<8x1xf32>
    %cst_86 = arith.constant 1.000000e+00 : f32
    %376 = vector.broadcast %cst_86 : f32 to vector<8x1xf32>
    %377 = arith.addf %376, %375 : vector<8x1xf32>
    %378 = arith.divf %376, %377 : vector<8x1xf32>
    %c0_87 = arith.constant 0 : index
    %c0_88 = arith.constant 0 : index
    %379 = vector.load %arg9[%c0_87, %c0_88] : memref<8x1xf32, #tpu.memory_space<vmem>>, vector<8x1xf32>
    tpu.vector_store %arg9[%c0_87, %c0_88], %378 {strides = array<i32>} : memref<8x1xf32, #tpu.memory_space<vmem>>, vector<8x1xf32>,
    return
  }
}

</mosaic_0001>

<bundles_post_ra>
// kernel: attention_classifier_forward.1
= control target key start
LH: loop header
LB: loop body
LE: loop exit
PB: predicated region body
PF: predicated region fallthrough
CT: control target
= control target key end

     0   :  { %v3390_v0 = vmov 0   ;;  %v3391_v13 = vmov 0.0|0.0   ;;  %v42_v14 = vlaneseq  ;;  %vm103_vm0 = vcmask 261120   ;;  %s3394_s16 = smov 64   ;;  %s3945_s0 = inlined_call_operand.vmem [shape: s32[64,1], index: 0, kind: input, shape index: {}]   ;;  %s3946_s1 = inlined_call_operand.vmem [shape: f32[32,128], index: 1, kind: input, shape index: {}]   ;;  %s3947_s2 = inlined_call_operand.vmem [shape: f32[32,128], index: 2, kind: input, shape index: {}]   ;;  %s3948_s3 = inlined_call_operand.vmem [shape: f32[1,128], index: 3, kind: input, shape index: {}]   ;;  %s3949_s4 = inlined_call_operand.vmem [shape: f32[32,128], index: 4, kind: input, shape index: {}]   ;;  %s3950_s5 = inlined_call_operand.vmem [shape: f32[32,128], index: 5, kind: input, shape index: {}]   ;;  %s3951_s6 = inlined_call_operand.vmem [shape: f32[1,128], index: 6, kind: input, shape index: {}]   ;;  %s3952_s8 = inlined_call_operand.<no memory space> [shape: f32[1,1], index: 8, kind: input, shape index: {}]   ;;  %s3953_s7 = inlined_call_operand.vmem [shape: f32[1,32], index: 7, kind: input, shape index: {}]   ;;  %s3954_s9 = inlined_call_operand.vmem [shape: f32[8,1], index: 9, kind: output, shape index: {}]  }
   0x1   :  { %3239 = vset.pattern.permute.xlu1 %v3390_v0  ;;  %3238 = vset.pattern.permute.xlu0 %v3390_v0  ;;  %v40_v1 = vld [vmem:[%s3945_s0 + $0x30] sm:$0xff]  ;;  %v38_v2 = vld [vmem:[%s3945_s0 + $0x20] sm:$0xff]  ;;  %v39_v3 = vld [vmem:[%s3945_s0 + $0x28] sm:$0xff]  ;;  %v3392_v20 = vmov 0.0   ;;  %vm3393_vm7 = vmmov 0   ;;  %vm2571_vm10 = vcmask 7168  }
   0x2   :  { %63 = vperm.xlu1 %3239, %v40_v1   ;;  %57 = vperm.xlu0 %3238, %v38_v2   ;;  %v34_v4 = vld [vmem:[%s3945_s0] sm:$0xff]  ;;  %v93_v6 = vld [vmem:[%s3946_s1 + $0x8] sm:$0xff]  ;;  %v94_v7 = vld [vmem:[%s3946_s1 + $0x10] sm:$0xff]  ;;  %v3478_v15 = vand.u32 127, %v42_v14 }
   0x3   :  { %v92_v5 = vld [vmem:[%s3946_s1] sm:$0xff]  ;;  %v95_v9 = vld [vmem:[%s3946_s1 + $0x18] sm:$0xff]  ;;  %v35_v12 = vld [vmem:[%s3945_s0 + $0x8] sm:$0xff] }
   0x4   :  { %v3052_v8 = vpack.c.bf16 %v93_v6, %v92_v5  ;;  %v3056_v10 = vpack.c.bf16 %v95_v9, %v94_v7  ;;  %v41_v11 = vld [vmem:[%s3945_s0 + $0x38] sm:$0xff]  ;;  %v233_v18 = vld [vmem:[%s3947_s2] sm:$0xff]  ;;  %v234_v19 = vld [vmem:[%s3947_s2 + $0x8] sm:$0xff] }
   0x5   :  { %v3490_v24 = vpack.c.bf16 %v234_v19, %v233_v18  ;;  %v235_v25 = vld [vmem:[%s3947_s2 + $0x10] sm:$0xff]  ;;  %v236_v26 = vld [vmem:[%s3947_s2 + $0x18] sm:$0xff]  ;;  %v3538_v39 = vld [vmem:[%s3948_s3] ss:$0 sm:$0xff]  ;;  %s3395_s3 = smov 32  }
   0x6   :  { %60 = vperm.xlu0 %3238, %v39_v3   ;;  %45 = vperm.xlu1 %3239, %v34_v4   ;;  %v3507_v32 = vpack.c.bf16 %v236_v26, %v235_v25  ;;  %v36_v53 = vld [vmem:[%s3945_s0 + $0x10] sm:$0xff]  ;;  %v37_v58 = vld [vmem:[%s3945_s0 + $0x18] sm:$0xff]  ;;  %v241_v61 = vld [vmem:[%s3949_s4] sm:$0xff] }
   0x7   :  { %3204 = vmatprep.subr.bf16.mxu1 %v3052_v8  ;;  %3053 = vmatprep.subr.bf16.mxu0 %v3052_v8  ;;  %v242_v62 = vld [vmem:[%s3949_s4 + $0x8] sm:$0xff]  ;;  %v243_v63 = vld [vmem:[%s3949_s4 + $0x10] sm:$0xff]  ;;  %v244_v1 = vld [vmem:[%s3949_s4 + $0x18] sm:$0xff] }
   0x8   :  { %3206 = vmatpush3.bf16.msra.mxu1 %v3052_v8  ;;  %3055 = vmatpush3.bf16.msra.mxu0 %v3052_v8  ;;  %v3567_v0 = vpack.c.bf16 %v242_v62, %v241_v61  ;;  %v3573_v2 = vpack.c.bf16 %v244_v1, %v243_v63  ;;  %v237_v7 = vld [vmem:[%s3950_s5] sm:$0xff]  ;;  %v238_v8 = vld [vmem:[%s3950_s5 + $0x8] sm:$0xff] }
   0x9   :  { %3205 = vmatprep.subr.bf16.mxu1 %v3056_v10  ;;  %3057 = vmatprep.subr.bf16.mxu0 %v3056_v10  ;;  %v3590_v9 = vpack.c.bf16 %v238_v8, %v237_v7 }
   0xa   :  { %66 = vperm.xlu0 %3238, %v41_v11   ;;  %48 = vperm.xlu1 %3239, %v35_v12   ;;  %v240_v11 = vld [vmem:[%s3950_s5 + $0x18] sm:$0xff] }
   0xc   :  { %3207 = vmatpush3.bf16.msra.mxu1 %v3056_v10  ;;  %3059 = vmatpush3.bf16.msra.mxu0 %v3056_v10  ;;  %v239_v10 = vld [vmem:[%s3950_s5 + $0x10] sm:$0xff] }
   0xd   :  { %3060 = vmatprep.subr.bf16.mxu1 %v3391_v13  ;;  %3078 = vmatprep.subr.bf16.mxu0 %v3391_v13  ;;  %v3601_v14 = vpack.c.bf16 %v240_v11, %v239_v10 }
  0x81   :  { %v64_v16 = vpop.permute.xlu1 %63  ;;  %v58_v17 = vpop.permute.xlu0 %57 }
  0x82   :  { %vm72_vm1 = vcmp.eq.s32.totalorder %v58_v17, %v3478_v15  ;;  %vm74_vm2 = vcmp.eq.s32.totalorder %v64_v16, %v3478_v15 }
  0x83   :  { %v2581_v21 = vsel %vm72_vm1, 1.0, %v3392_v20  ;;  %v2583_v29 = vsel %vm74_vm2, 1.0, %v3392_v20 }
  0x84   :  { %2782 = vmatprep.mubr.msk.f32.mxu1 %vm103_vm0, %v2581_v21 }
  0x85   :  { %v61_v22 = vpop.permute.xlu0 %60  ;;  %v46_v23 = vpop.permute.xlu1 %45 }
  0x86   :  { %vm73_vm3 = vcmp.eq.s32.totalorder %v61_v22, %v3478_v15  ;;  %vm68_vm4 = vcmp.eq.s32.totalorder %v46_v23, %v3478_v15  ;;  %v3630_v22 = vld [vmem:[%s3951_s6] ss:$0 sm:$0xff] }
  0x87   :  { %v2582_v27 = vsel %vm73_vm3, 1.0, %v3392_v20  ;;  %v2577_v28 = vsel %vm68_vm4, 1.0, %v3392_v20 }
  0x88   :  { %2776 = vmatprep.mubr.msk.f32.mxu0 %vm103_vm0, %v2577_v28  ;;  %2783 = vmatmul.mubr.msk.f32.vlgmr.msra.gmra.mrb[0].mxu1 %vm103_vm0, %v2582_v27 }
  0x89   :  { %3062 = vmatpush3.bf16.msra.mxu1 %v3490_v24  ;;  %2785 = vmatprep.mubr.msk.f32.mxu1 %vm103_vm0, %v2583_v29  ;;  %v67_v30 = vpop.permute.xlu0 %66  ;;  %v49_v31 = vpop.permute.xlu1 %48 }
  0x8a   :  { %vm75_vm5 = vcmp.eq.s32.totalorder %v67_v30, %v3478_v15  ;;  %vm69_vm6 = vcmp.eq.s32.totalorder %v49_v31, %v3478_v15  ;;  %3063 = vmatprep.subr.bf16.mxu1 %v3391_v13 }
  0x8b   :  { %v2584_v33 = vsel %vm75_vm5, 1.0, %v3392_v20  ;;  %v2578_v34 = vsel %vm69_vm6, 1.0, %v3392_v20 }
  0x8c   :  { %2777 = vmatmul.mubr.msk.f32.vlgmr.msra.gmra.mrb[0].mxu0 %vm103_vm0, %v2578_v34  ;;  %2786 = vmatmul.mubr.msk.f32.gmra.mrb[2].mxu1 %vm103_vm0, %v2584_v33 }
  0x8d   :  { %3065 = vmatpush3.bf16.msra.mxu1 %v3507_v32  ;;  %2796 = vmatprep.mubr.msk.f32.mxu1 %vm3393_vm7, %v3392_v20 }
  0x8e   :  { %3066 = vmatprep.subr.bf16.mxu1 %v3391_v13  ;;  %3080 = vmatpush3.bf16.msra.mxu0 %v3490_v24 }
  0x8f   :  { %3081 = vmatprep.subr.bf16.mxu0 %v3391_v13 }
  0x90   :  { %2797 = vmatmul.mubr.f32.vlgmr.msra.gmra.mrb[4].mxu1 %v3392_v20 }
  0x91   :  { %2807 = vmatprep.mubr.msk.f32.mxu1 %vm3393_vm7, %v3392_v20  ;;  %3068 = vmatpush3.bf16.msra.mxu1 %v3567_v0 }
  0x92   :  { %3083 = vmatpush3.bf16.msra.mxu0 %v3507_v32  ;;  %3069 = vmatprep.subr.bf16.mxu1 %v3391_v13 }
  0x93   :  { %3084 = vmatprep.subr.bf16.mxu0 %v3391_v13 }
  0x95   :  { %3071 = vmatpush3.bf16.msra.mxu1 %v3573_v2 }
  0x96   :  { %3072 = vmatprep.subr.bf16.mxu1 %v3391_v13 }
 0x15b   :  { %v3527_v35 = vpop.f32.mrb[0].mxu1 }
 0x15c   :  { %v3529_v36 = vpop.f32.mrb[1].mxu1 }
 0x15f   :  { %v3531_v37 = vpop.f32.mrb[0].mxu0  ;;  %v3533_v38 = vpop.f32.mrb[2].mxu1 }
 0x160   :  { %v194_v40 = vpop.f32.mrb[1].mxu0  ;;  %v3540_v41 = vpop.f32.mrb[3].mxu1  ;;  %v200_v17 = vadd.f32 %v3531_v37, %v3538_v39 }
 0x161   :  { %v195_v42 = vadd.f32 %v3538_v39, %v194_v40 }
 0x163   :  { %v315_v43 = vpop.f32.mrb[4].mxu1 }
 0x164   :  { %v319_v44 = vadd.f32 %v315_v43, %v195_v42  ;;  %v2798_v45 = vpop.f32.mrb[5].mxu1 }
 0x166   :  { %3240 = vtanh.f32 %v319_v44  ;;  %v2594_v47 = vmul.f32 -1.442695, %v319_v44 }
 0x168   :  { %3242 = vpow2.f32 %v2594_v47 }
 0x170   :  { %v3241_v46 = vpop.eup %3240 }
 0x171   :  { %329 = vrot.lane.b32.xlu0 %v3241_v46, %s3394_s16 }
 0x172   :  { %v3243_v48 = vpop.eup %3242 }
 0x173   :  { %v323_v49 = vadd.f32 1.0, %v3243_v48 }
 0x175   :  { %3244 = vrcp.f32 %v323_v49 }
 0x17f   :  { %v3245_v50 = vpop.eup %3244 }
 0x180   :  { %v327_v54 = vmul.f32 0.0, %v3245_v50 }
 0x1e3   :  { %v330_v51 = vpop.permute.xlu0 %329 }
 0x1e4   :  { %v332_v52 = vmul.f32 %v3245_v50, %v330_v51 }
 0x1e6   :  { %334 = vrot.lane.b32.xlu1 %v332_v52, %s3395_s3 }
 0x1ea   :  { %51 = vperm.xlu1 %3239, %v36_v53  }
 0x258   :  { %v335_v55 = vpop.permute.xlu1 %334 }
 0x259   :  { %v3548_v56 = vadd.f32 %v335_v55, %v327_v54 }
 0x25b   :  { %3246 = vtanh.f32 %v3548_v56 }
 0x265   :  { %v3247_v57 = vpop.eup %3246 }
 0x266   :  { %340 = vrot.lane.b32.xlu0 %v3247_v57, %s3394_s16 }
 0x269   :  { %v52_v59 = vpop.permute.xlu1 %51 }
 0x26a   :  { %vm70_vm8 = vcmp.eq.s32.totalorder %v52_v59, %v3478_v15  ;;  %54 = vperm.xlu0 %3238, %v37_v58  }
 0x26b   :  { %v2579_v60 = vsel %vm70_vm8, 1.0, %v3392_v20 }
 0x26c   :  { %2779 = vmatprep.mubr.msk.f32.mxu0 %vm103_vm0, %v2579_v60 }
 0x2d8   :  { %v341_v3 = vpop.permute.xlu0 %340 }
 0x2d9   :  { %v343_v4 = vmul.f32 %v3245_v50, %v341_v3 }
 0x2db   :  { %351 = vrot.lane.b32.xlu1 %v343_v4, %s3395_s3 }
 0x2e9   :  { %v55_v5 = vpop.permute.xlu0 %54 }
 0x2ea   :  { %vm71_vm9 = vcmp.eq.s32.totalorder %v55_v5, %v3478_v15 }
 0x2eb   :  { %v2580_v6 = vsel %vm71_vm9, 1.0, %v3392_v20 }
 0x2ec   :  { %2780 = vmatmul.mubr.msk.f32.gmra.mrb[2].mxu0 %vm103_vm0, %v2580_v6 }
 0x2ed   :  { %2829 = vmatprep.mubr.msk.f32.mxu0 %vm3393_vm7, %v3392_v20 }
 0x34d   :  { %v352_v12 = vpop.permute.xlu1 %351 }
 0x34e   :  { %2808 = vmatmul.mubr.msk.f32.vlgmr.msra.gmra.mrb[6].mxu1 %vm103_vm0, %v352_v12  ;;  %2830 = vmatmul.mubr.msk.f32.vlgmr.msra.gmra.mrb[4].mxu0 %vm103_vm0, %v352_v12 }
 0x34f   :  { %3074 = vmatpush3.bf16.msra.mxu1 %v3590_v9  ;;  %2818 = vmatprep.mubr.msk.f32.mxu1 %vm3393_vm7, %v3392_v20 }
 0x350   :  { %3075 = vmatprep.subr.bf16.mxu1 %v3391_v13  ;;  %3086 = vmatpush3.bf16.msra.mxu0 %v3567_v0 }
 0x351   :  { %3087 = vmatprep.subr.bf16.mxu0 %v3391_v13  ;;  %2840 = vmatprep.mubr.msk.f32.mxu0 %vm3393_vm7, %v3392_v20 }
 0x353   :  { %3077 = vmatpush3.bf16.msra.mxu1 %v3601_v14 }
 0x354   :  { %3096 = vmatprep.subr.bf16.mxu1 %v3391_v13  ;;  %3089 = vmatpush3.bf16.msra.mxu0 %v3573_v2 }
 0x355   :  { %3090 = vmatprep.subr.bf16.mxu0 %v3391_v13 }
 0x356   :  { %2819 = vmatmul.mubr.f32.vlgmr.msra.gmra.mrb[6].mxu1 %v3392_v20 }
 0x357   :  { %3098 = vmatpush3.bf16.msra.mxu1 %v3490_v24  ;;  %2862 = vmatprep.mubr.msk.f32.mxu1 %vm3393_vm7, %v3392_v20 }
 0x358   :  { %3099 = vmatprep.subr.bf16.mxu1 %v3391_v13 }
 0x35b   :  { %3101 = vmatpush3.bf16.msra.mxu1 %v3507_v32 }
 0x35c   :  { %3102 = vmatprep.subr.bf16.mxu1 %v3391_v13 }
 0x3bf   :  { %v3621_v15 = vpop.f32.mrb[2].mxu0 }
 0x3c0   :  { %v3623_v16 = vpop.f32.mrb[3].mxu0 }
 0x3c1   :  { %v205_v61 = vadd.f32 %v3538_v39, %v3623_v16 }
 0x421   :  { %v591_v18 = vpop.f32.mrb[4].mxu0 }
 0x422   :  { %v595_v19 = vadd.f32 %v591_v18, %v200_v17  ;;  %v2831_v21 = vpop.f32.mrb[5].mxu0 }
 0x424   :  { %3248 = vtanh.f32 %v595_v19  ;;  %v2599_v29 = vmul.f32 -1.442695, %v595_v19 }
 0x429   :  { %v491_v23 = vpop.f32.mrb[6].mxu1 }
 0x42a   :  { %v3208_v25 = vadd.f32 %v3630_v22, %v491_v23  ;;  %v2820_v26 = vpop.f32.mrb[7].mxu1 }
 0x42c   :  { %3250 = vtanh.f32 %v3208_v25  ;;  %v2597_v30 = vmul.f32 -1.442695, %v3208_v25 }
 0x42d   :  { %3252 = vpow2.f32 %v2599_v29 }
 0x42e   :  { %v3249_v27 = vpop.eup %3248  ;;  %3254 = vpow2.f32 %v2597_v30 }
 0x42f   :  { %605 = vrot.lane.b32.xlu0 %v3249_v27, %s3394_s16 }
 0x436   :  { %v3251_v28 = vpop.eup %3250 }
 0x437   :  { %505 = vrot.lane.b32.xlu1 %v3251_v28, %s3394_s16  ;;  %v3253_v31 = vpop.eup %3252 }
 0x438   :  { %v599_v33 = vadd.f32 1.0, %v3253_v31  ;;  %v3255_v34 = vpop.eup %3254 }
 0x439   :  { %v499_v37 = vadd.f32 1.0, %v3255_v34 }
 0x43a   :  { %3256 = vrcp.f32 %v599_v33 }
 0x43b   :  { %3258 = vrcp.f32 %v499_v37 }
 0x444   :  { %v3257_v40 = vpop.eup %3256 }
 0x445   :  { %v3259_v44 = vpop.eup %3258  ;;  %v603_v47 = vmul.f32 %v3257_v40, %v3548_v56 }
 0x446   :  { %v503_v50 = vmul.f32 0.0, %v3259_v44 }
 0x4a1   :  { %v606_v42 = vpop.permute.xlu0 %605 }
 0x4a2   :  { %v608_v43 = vmul.f32 %v3257_v40, %v606_v42 }
 0x4a4   :  { %610 = vrot.lane.b32.xlu0 %v608_v43, %s3395_s3 }
 0x4a9   :  { %v506_v45 = vpop.permute.xlu1 %505 }
 0x4aa   :  { %v508_v46 = vmul.f32 %v3259_v44, %v506_v45 }
 0x4ac   :  { %510 = vrot.lane.b32.xlu1 %v508_v46, %s3395_s3 }
 0x516   :  { %v611_v48 = vpop.permute.xlu0 %610 }
 0x517   :  { %v3638_v49 = vadd.f32 %v611_v48, %v603_v47  ;;  %v210_v47 = vadd.f32 %v3621_v15, %v3538_v39 }
 0x519   :  { %3260 = vtanh.f32 %v3638_v49 }
 0x51e   :  { %v511_v51 = vpop.permute.xlu1 %510 }
 0x51f   :  { %v3641_v52 = vadd.f32 %v511_v51, %v503_v50 }
 0x521   :  { %3262 = vtanh.f32 %v3641_v52 }
 0x523   :  { %v3261_v53 = vpop.eup %3260 }
 0x524   :  { %616 = vrot.lane.b32.xlu0 %v3261_v53, %s3394_s16 }
 0x52b   :  { %v3263_v54 = vpop.eup %3262 }
 0x52c   :  { %516 = vrot.lane.b32.xlu1 %v3263_v54, %s3394_s16 }
 0x596   :  { %v617_v55 = vpop.permute.xlu0 %616 }
 0x597   :  { %v619_v57 = vmul.f32 %v3257_v40, %v617_v55 }
 0x599   :  { %621 = vrot.lane.b32.xlu0 %v619_v57, %s3395_s3 }
 0x59e   :  { %v517_v56 = vpop.permute.xlu1 %516 }
 0x59f   :  { %v519_v58 = vmul.f32 %v3259_v44, %v517_v56 }
 0x5a1   :  { %521 = vrot.lane.b32.xlu1 %v519_v58, %s3395_s3 }
 0x60b   :  { %v622_v59 = vpop.permute.xlu0 %621 }
 0x60c   :  { %2841 = vmatmul.mubr.msk.f32.vlgmr.msra.gmra.mrb[6].mxu0 %vm103_vm0, %v622_v59  ;;  %2863 = vmatmul.mubr.msk.f32.vlgmr.msra.gmra.mrb[8].mxu1 %vm103_vm0, %v622_v59 }
 0x60d   :  { %3092 = vmatpush3.bf16.msra.mxu0 %v3590_v9  ;;  %2851 = vmatprep.mubr.msk.f32.mxu0 %vm3393_vm7, %v3392_v20 }
 0x60e   :  { %3093 = vmatprep.subr.bf16.mxu0 %v3391_v13  ;;  %3104 = vmatpush3.bf16.msra.mxu1 %v3567_v0 }
 0x60f   :  { %3105 = vmatprep.subr.bf16.mxu1 %v3391_v13  ;;  %2873 = vmatprep.mubr.msk.f32.mxu1 %vm3393_vm7, %v3392_v20 }
 0x611   :  { %3095 = vmatpush3.bf16.msra.mxu0 %v3601_v14 }
 0x612   :  { %3114 = vmatprep.subr.bf16.mxu0 %v3391_v13  ;;  %3107 = vmatpush3.bf16.msra.mxu1 %v3573_v2 }
 0x613   :  { %v522_v60 = vpop.permute.xlu1 %521  ;;  %3108 = vmatprep.subr.bf16.mxu1 %v3391_v13 }
 0x614   :  { %524 = vst.msk [vmem:[#allocation2] sm:$0xff] %vm103_vm0, %v522_v60  ;;  %2852 = vmatmul.mubr.msk.f32.vlgmr.msra.gmra.mrb[6].mxu0 %vm103_vm0, %v522_v60 }
 0x615   :  { %3116 = vmatpush3.bf16.msra.mxu0 %v3490_v24  ;;  %2895 = vmatprep.mubr.msk.f32.mxu0 %vm3393_vm7, %v3392_v20 }
 0x616   :  { %3117 = vmatprep.subr.bf16.mxu0 %v3391_v13 }
 0x619   :  { %3119 = vmatpush3.bf16.msra.mxu0 %v3507_v32 }
 0x61a   :  { %3120 = vmatprep.subr.bf16.mxu0 %v3391_v13 }
 0x6df   :  { %v864_v62 = vpop.f32.mrb[8].mxu1 }
 0x6e0   :  { %v868_v63 = vadd.f32 %v864_v62, %v205_v61  ;;  %v2864_v1 = vpop.f32.mrb[9].mxu1 }
 0x6e2   :  { %3264 = vtanh.f32 %v868_v63  ;;  %v2604_v8 = vmul.f32 -1.442695, %v868_v63 }
 0x6e7   :  { %v763_v3 = vpop.f32.mrb[6].mxu0 }
 0x6e8   :  { %v3209_v4 = vadd.f32 %v3630_v22, %v763_v3  ;;  %v2853_v5 = vpop.f32.mrb[7].mxu0 }
 0x6ea   :  { %3266 = vtanh.f32 %v3209_v4  ;;  %v2602_v10 = vmul.f32 -1.442695, %v3209_v4 }
 0x6eb   :  { %3268 = vpow2.f32 %v2604_v8 }
 0x6ec   :  { %v3265_v6 = vpop.eup %3264  ;;  %3270 = vpow2.f32 %v2602_v10 }
 0x6ed   :  { %878 = vrot.lane.b32.xlu0 %v3265_v6, %s3394_s16 }
 0x6f4   :  { %v3267_v7 = vpop.eup %3266 }
 0x6f5   :  { %777 = vrot.lane.b32.xlu1 %v3267_v7, %s3394_s16  ;;  %v3269_v11 = vpop.eup %3268 }
 0x6f6   :  { %v872_v12 = vadd.f32 1.0, %v3269_v11  ;;  %v3271_v16 = vpop.eup %3270 }
 0x6f7   :  { %v771_v17 = vadd.f32 1.0, %v3271_v16 }
 0x6f8   :  { %3272 = vrcp.f32 %v872_v12 }
 0x6f9   :  { %3274 = vrcp.f32 %v771_v17 }
 0x702   :  { %v3273_v18 = vpop.eup %3272 }
 0x703   :  { %v3275_v23 = vpop.eup %3274  ;;  %v876_v27 = vmul.f32 %v3273_v18, %v3638_v49 }
 0x704   :  { %v775_v30 = vmul.f32 %v3275_v23, %v3641_v52 }
 0x75f   :  { %v879_v19 = vpop.permute.xlu0 %878 }
 0x760   :  { %v881_v21 = vmul.f32 %v3273_v18, %v879_v19 }
 0x762   :  { %883 = vrot.lane.b32.xlu0 %v881_v21, %s3395_s3 }
 0x767   :  { %v778_v25 = vpop.permute.xlu1 %777 }
 0x768   :  { %v780_v26 = vmul.f32 %v3275_v23, %v778_v25 }
 0x76a   :  { %782 = vrot.lane.b32.xlu1 %v780_v26, %s3395_s3  ;;  %v215_v26 = vadd.f32 %v3538_v39, %v3529_v36 }
 0x7d4   :  { %v884_v28 = vpop.permute.xlu0 %883 }
 0x7d5   :  { %v3678_v29 = vadd.f32 %v884_v28, %v876_v27 }
 0x7d7   :  { %3276 = vtanh.f32 %v3678_v29 }
 0x7dc   :  { %v783_v31 = vpop.permute.xlu1 %782 }
 0x7dd   :  { %v3682_v33 = vadd.f32 %v783_v31, %v775_v30 }
 0x7df   :  { %3278 = vtanh.f32 %v3682_v33 }
 0x7e1   :  { %v3277_v34 = vpop.eup %3276 }
 0x7e2   :  { %889 = vrot.lane.b32.xlu0 %v3277_v34, %s3394_s16 }
 0x7e9   :  { %v3279_v37 = vpop.eup %3278 }
 0x7ea   :  { %788 = vrot.lane.b32.xlu1 %v3279_v37, %s3394_s16 }
 0x854   :  { %v890_v40 = vpop.permute.xlu0 %889 }
 0x855   :  { %v892_v42 = vmul.f32 %v3273_v18, %v890_v40 }
 0x857   :  { %894 = vrot.lane.b32.xlu0 %v892_v42, %s3395_s3 }
 0x85c   :  { %v789_v43 = vpop.permute.xlu1 %788 }
 0x85d   :  { %v791_v44 = vmul.f32 %v3275_v23, %v789_v43 }
 0x85f   :  { %793 = vrot.lane.b32.xlu1 %v791_v44, %s3395_s3 }
 0x8c9   :  { %v895_v45 = vpop.permute.xlu0 %894 }
 0x8ca   :  { %2874 = vmatmul.mubr.msk.f32.vlgmr.msra.gmra.mrb[10].mxu1 %vm103_vm0, %v895_v45  ;;  %2896 = vmatmul.mubr.msk.f32.vlgmr.msra.gmra.mrb[8].mxu0 %vm103_vm0, %v895_v45 }
 0x8cb   :  { %3110 = vmatpush3.bf16.msra.mxu1 %v3590_v9  ;;  %2884 = vmatprep.mubr.msk.f32.mxu1 %vm3393_vm7, %v3392_v20 }
 0x8cc   :  { %3111 = vmatprep.subr.bf16.mxu1 %v3391_v13  ;;  %3122 = vmatpush3.bf16.msra.mxu0 %v3567_v0 }
 0x8cd   :  { %3123 = vmatprep.subr.bf16.mxu0 %v3391_v13  ;;  %2906 = vmatprep.mubr.msk.f32.mxu0 %vm3393_vm7, %v3392_v20 }
 0x8cf   :  { %3113 = vmatpush3.bf16.msra.mxu1 %v3601_v14 }
 0x8d0   :  { %3132 = vmatprep.subr.bf16.mxu1 %v3391_v13  ;;  %3125 = vmatpush3.bf16.msra.mxu0 %v3573_v2 }
 0x8d1   :  { %v794_v46 = vpop.permute.xlu1 %793  ;;  %3126 = vmatprep.subr.bf16.mxu0 %v3391_v13 }
 0x8d2   :  { %797 = vst.msk [vmem:[#allocation2 + $0x8] sm:$0xff] %vm103_vm0, %v794_v46  ;;  %2885 = vmatmul.mubr.msk.f32.vlgmr.msra.gmra.mrb[10].mxu1 %vm103_vm0, %v794_v46 }
 0x8d3   :  { %3134 = vmatpush3.bf16.msra.mxu1 %v3490_v24  ;;  %2928 = vmatprep.mubr.msk.f32.mxu1 %vm3393_vm7, %v3392_v20 }
 0x8d4   :  { %3135 = vmatprep.subr.bf16.mxu1 %v3391_v13 }
 0x8d7   :  { %3137 = vmatpush3.bf16.msra.mxu1 %v3507_v32 }
 0x8d8   :  { %3138 = vmatprep.subr.bf16.mxu1 %v3391_v13 }
 0x99d   :  { %v1137_v48 = vpop.f32.mrb[8].mxu0 }
 0x99e   :  { %v1141_v49 = vadd.f32 %v1137_v48, %v210_v47  ;;  %v2897_v50 = vpop.f32.mrb[9].mxu0 }
 0x9a0   :  { %3280 = vtanh.f32 %v1141_v49  ;;  %v2609_v57 = vmul.f32 -1.442695, %v1141_v49 }
 0x9a5   :  { %v1036_v51 = vpop.f32.mrb[10].mxu1 }
 0x9a6   :  { %v3210_v52 = vadd.f32 %v3630_v22, %v1036_v51  ;;  %v2886_v53 = vpop.f32.mrb[11].mxu1 }
 0x9a8   :  { %3282 = vtanh.f32 %v3210_v52  ;;  %v2607_v56 = vmul.f32 -1.442695, %v3210_v52 }
 0x9a9   :  { %3284 = vpow2.f32 %v2609_v57 }
 0x9aa   :  { %v3281_v54 = vpop.eup %3280  ;;  %3286 = vpow2.f32 %v2607_v56 }
 0x9ab   :  { %1151 = vrot.lane.b32.xlu0 %v3281_v54, %s3394_s16 }
 0x9b2   :  { %v3283_v55 = vpop.eup %3282 }
 0x9b3   :  { %1050 = vrot.lane.b32.xlu1 %v3283_v55, %s3394_s16  ;;  %v3285_v15 = vpop.eup %3284 }
 0x9b4   :  { %v1145_v58 = vadd.f32 1.0, %v3285_v15  ;;  %v3287_v59 = vpop.eup %3286 }
 0x9b5   :  { %v1044_v60 = vadd.f32 1.0, %v3287_v59 }
 0x9b6   :  { %3288 = vrcp.f32 %v1145_v58 }
 0x9b7   :  { %3290 = vrcp.f32 %v1044_v60 }
 0x9c0   :  { %v3289_v61 = vpop.eup %3288 }
 0x9c1   :  { %v3291_v1 = vpop.eup %3290  ;;  %v1149_v5 = vmul.f32 %v3289_v61, %v3678_v29 }
 0x9c2   :  { %v1048_v8 = vmul.f32 %v3291_v1, %v3682_v33 }
 0xa1d   :  { %v1152_v62 = vpop.permute.xlu0 %1151 }
 0xa1e   :  { %v1154_v63 = vmul.f32 %v3289_v61, %v1152_v62 }
 0xa20   :  { %1156 = vrot.lane.b32.xlu0 %v1154_v63, %s3395_s3 }
 0xa25   :  { %v1051_v3 = vpop.permute.xlu1 %1050 }
 0xa26   :  { %v1053_v4 = vmul.f32 %v3291_v1, %v1051_v3  ;;  %v220_v3 = vadd.f32 %v3527_v35, %v3538_v39 }
 0xa28   :  { %1055 = vrot.lane.b32.xlu1 %v1053_v4, %s3395_s3 }
 0xa92   :  { %v1157_v6 = vpop.permute.xlu0 %1156 }
 0xa93   :  { %v3719_v7 = vadd.f32 %v1157_v6, %v1149_v5 }
 0xa95   :  { %3292 = vtanh.f32 %v3719_v7 }
 0xa9a   :  { %v1056_v10 = vpop.permute.xlu1 %1055 }
 0xa9b   :  { %v3723_v11 = vadd.f32 %v1056_v10, %v1048_v8 }
 0xa9d   :  { %3294 = vtanh.f32 %v3723_v11 }
 0xa9f   :  { %v3293_v12 = vpop.eup %3292 }
 0xaa0   :  { %1162 = vrot.lane.b32.xlu0 %v3293_v12, %s3394_s16 }
 0xaa7   :  { %v3295_v16 = vpop.eup %3294 }
 0xaa8   :  { %1061 = vrot.lane.b32.xlu1 %v3295_v16, %s3394_s16 }
 0xb12   :  { %v1163_v17 = vpop.permute.xlu0 %1162 }
 0xb13   :  { %v1165_v18 = vmul.f32 %v3289_v61, %v1163_v17 }
 0xb15   :  { %1167 = vrot.lane.b32.xlu0 %v1165_v18, %s3395_s3 }
 0xb1a   :  { %v1062_v19 = vpop.permute.xlu1 %1061 }
 0xb1b   :  { %v1064_v21 = vmul.f32 %v3291_v1, %v1062_v19 }
 0xb1d   :  { %1066 = vrot.lane.b32.xlu1 %v1064_v21, %s3395_s3 }
 0xb87   :  { %v1168_v23 = vpop.permute.xlu0 %1167 }
 0xb88   :  { %2907 = vmatmul.mubr.msk.f32.vlgmr.msra.gmra.mrb[10].mxu0 %vm103_vm0, %v1168_v23  ;;  %2929 = vmatmul.mubr.msk.f32.vlgmr.msra.gmra.mrb[12].mxu1 %vm103_vm0, %v1168_v23 }
 0xb89   :  { %3128 = vmatpush3.bf16.msra.mxu0 %v3590_v9  ;;  %2917 = vmatprep.mubr.msk.f32.mxu0 %vm3393_vm7, %v3392_v20 }
 0xb8a   :  { %3129 = vmatprep.subr.bf16.mxu0 %v3391_v13  ;;  %3140 = vmatpush3.bf16.msra.mxu1 %v3567_v0 }
 0xb8b   :  { %3141 = vmatprep.subr.bf16.mxu1 %v3391_v13  ;;  %2939 = vmatprep.mubr.msk.f32.mxu1 %vm3393_vm7, %v3392_v20 }
 0xb8d   :  { %3131 = vmatpush3.bf16.msra.mxu0 %v3601_v14 }
 0xb8e   :  { %3150 = vmatprep.subr.bf16.mxu0 %v3391_v13  ;;  %3143 = vmatpush3.bf16.msra.mxu1 %v3573_v2 }
 0xb8f   :  { %v1067_v25 = vpop.permute.xlu1 %1066  ;;  %3144 = vmatprep.subr.bf16.mxu1 %v3391_v13 }
 0xb90   :  { %1070 = vst.msk [vmem:[#allocation2 + $0x10] sm:$0xff] %vm103_vm0, %v1067_v25  ;;  %2918 = vmatmul.mubr.msk.f32.vlgmr.msra.gmra.mrb[10].mxu0 %vm103_vm0, %v1067_v25 }
 0xb91   :  { %3152 = vmatpush3.bf16.msra.mxu0 %v3490_v24  ;;  %2961 = vmatprep.mubr.msk.f32.mxu0 %vm3393_vm7, %v3392_v20 }
 0xb92   :  { %3153 = vmatprep.subr.bf16.mxu0 %v3391_v13 }
 0xb95   :  { %3155 = vmatpush3.bf16.msra.mxu0 %v3507_v32 }
 0xb96   :  { %3156 = vmatprep.subr.bf16.mxu0 %v3391_v13 }
 0xc5b   :  { %v1410_v27 = vpop.f32.mrb[12].mxu1 }
 0xc5c   :  { %v1414_v28 = vadd.f32 %v1410_v27, %v215_v26  ;;  %v2930_v29 = vpop.f32.mrb[13].mxu1 }
 0xc5e   :  { %3296 = vtanh.f32 %v1414_v28  ;;  %v2614_v40 = vmul.f32 -1.442695, %v1414_v28 }
 0xc63   :  { %v1309_v30 = vpop.f32.mrb[10].mxu0 }
 0xc64   :  { %v3211_v31 = vadd.f32 %v3630_v22, %v1309_v30  ;;  %v2919_v33 = vpop.f32.mrb[11].mxu0 }
 0xc66   :  { %3298 = vtanh.f32 %v3211_v31  ;;  %v2612_v42 = vmul.f32 -1.442695, %v3211_v31 }
 0xc67   :  { %3300 = vpow2.f32 %v2614_v40 }
 0xc68   :  { %v3297_v34 = vpop.eup %3296  ;;  %3302 = vpow2.f32 %v2612_v42 }
 0xc69   :  { %1424 = vrot.lane.b32.xlu0 %v3297_v34, %s3394_s16 }
 0xc70   :  { %v3299_v37 = vpop.eup %3298 }
 0xc71   :  { %1323 = vrot.lane.b32.xlu1 %v3299_v37, %s3394_s16  ;;  %v3301_v36 = vpop.eup %3300 }
 0xc72   :  { %v1418_v43 = vadd.f32 1.0, %v3301_v36  ;;  %v3303_v44 = vpop.eup %3302 }
 0xc73   :  { %v1317_v45 = vadd.f32 1.0, %v3303_v44 }
 0xc74   :  { %3304 = vrcp.f32 %v1418_v43 }
 0xc75   :  { %3306 = vrcp.f32 %v1317_v45 }
 0xc7e   :  { %v3305_v46 = vpop.eup %3304 }
 0xc7f   :  { %v3307_v49 = vpop.eup %3306  ;;  %v1422_v52 = vmul.f32 %v3305_v46, %v3719_v7 }
 0xc80   :  { %v1321_v55 = vmul.f32 %v3307_v49, %v3723_v11 }
 0xcdb   :  { %v1425_v47 = vpop.permute.xlu0 %1424 }
 0xcdc   :  { %v1427_v48 = vmul.f32 %v3305_v46, %v1425_v47 }
 0xcde   :  { %1429 = vrot.lane.b32.xlu0 %v1427_v48, %s3395_s3 }
 0xce3   :  { %v1324_v50 = vpop.permute.xlu1 %1323 }
 0xce4   :  { %v1326_v51 = vmul.f32 %v3307_v49, %v1324_v50 }
 0xce6   :  { %1328 = vrot.lane.b32.xlu1 %v1326_v51, %s3395_s3 }
 0xd50   :  { %v1430_v53 = vpop.permute.xlu0 %1429 }
 0xd51   :  { %v3760_v54 = vadd.f32 %v1430_v53, %v1422_v52 }
 0xd53   :  { %3308 = vtanh.f32 %v3760_v54 }
 0xd58   :  { %v1329_v57 = vpop.permute.xlu1 %1328 }
 0xd59   :  { %v3764_v56 = vadd.f32 %v1329_v57, %v1321_v55 }
 0xd5b   :  { %3310 = vtanh.f32 %v3764_v56 }
 0xd5d   :  { %v3309_v15 = vpop.eup %3308 }
 0xd5e   :  { %1435 = vrot.lane.b32.xlu0 %v3309_v15, %s3394_s16 }
 0xd65   :  { %v3311_v58 = vpop.eup %3310 }
 0xd66   :  { %1334 = vrot.lane.b32.xlu1 %v3311_v58, %s3394_s16 }
 0xdd0   :  { %v1436_v59 = vpop.permute.xlu0 %1435 }
 0xdd1   :  { %v1438_v60 = vmul.f32 %v3305_v46, %v1436_v59 }
 0xdd3   :  { %1440 = vrot.lane.b32.xlu0 %v1438_v60, %s3395_s3 }
 0xdd8   :  { %v1335_v61 = vpop.permute.xlu1 %1334 }
 0xdd9   :  { %v1337_v62 = vmul.f32 %v3307_v49, %v1335_v61  ;;  %v225_v49 = vadd.f32 %v3538_v39, %v3540_v41 }
 0xddb   :  { %1339 = vrot.lane.b32.xlu1 %v1337_v62, %s3395_s3 }
 0xe45   :  { %v1441_v63 = vpop.permute.xlu0 %1440 }
 0xe46   :  { %2940 = vmatmul.mubr.msk.f32.vlgmr.msra.gmra.mrb[14].mxu1 %vm103_vm0, %v1441_v63  ;;  %2962 = vmatmul.mubr.msk.f32.vlgmr.msra.gmra.mrb[12].mxu0 %vm103_vm0, %v1441_v63 }
 0xe47   :  { %3146 = vmatpush3.bf16.msra.mxu1 %v3590_v9  ;;  %2950 = vmatprep.mubr.msk.f32.mxu1 %vm3393_vm7, %v3392_v20 }
 0xe48   :  { %3147 = vmatprep.subr.bf16.mxu1 %v3391_v13  ;;  %3158 = vmatpush3.bf16.msra.mxu0 %v3567_v0 }
 0xe49   :  { %3159 = vmatprep.subr.bf16.mxu0 %v3391_v13  ;;  %2972 = vmatprep.mubr.msk.f32.mxu0 %vm3393_vm7, %v3392_v20 }
 0xe4b   :  { %3149 = vmatpush3.bf16.msra.mxu1 %v3601_v14 }
 0xe4c   :  { %3168 = vmatprep.subr.bf16.mxu1 %v3391_v13  ;;  %3161 = vmatpush3.bf16.msra.mxu0 %v3573_v2 }
 0xe4d   :  { %v1340_v1 = vpop.permute.xlu1 %1339  ;;  %3162 = vmatprep.subr.bf16.mxu0 %v3391_v13 }
 0xe4e   :  { %1343 = vst.msk [vmem:[#allocation2 + $0x18] sm:$0xff] %vm103_vm0, %v1340_v1  ;;  %2951 = vmatmul.mubr.msk.f32.vlgmr.msra.gmra.mrb[14].mxu1 %vm103_vm0, %v1340_v1 }
 0xe4f   :  { %3170 = vmatpush3.bf16.msra.mxu1 %v3490_v24  ;;  %2994 = vmatprep.mubr.msk.f32.mxu1 %vm3393_vm7, %v3392_v20 }
 0xe50   :  { %3171 = vmatprep.subr.bf16.mxu1 %v3391_v13 }
 0xe53   :  { %3173 = vmatpush3.bf16.msra.mxu1 %v3507_v32 }
 0xe54   :  { %3174 = vmatprep.subr.bf16.mxu1 %v3391_v13 }
 0xf19   :  { %v1683_v4 = vpop.f32.mrb[12].mxu0 }
 0xf1a   :  { %v1687_v5 = vadd.f32 %v1683_v4, %v220_v3  ;;  %v2963_v6 = vpop.f32.mrb[13].mxu0 }
 0xf1c   :  { %3312 = vtanh.f32 %v1687_v5  ;;  %v2619_v16 = vmul.f32 -1.442695, %v1687_v5 }
 0xf21   :  { %v1582_v7 = vpop.f32.mrb[14].mxu1 }
 0xf22   :  { %v3212_v8 = vadd.f32 %v3630_v22, %v1582_v7  ;;  %v2952_v10 = vpop.f32.mrb[15].mxu1 }
 0xf24   :  { %3314 = vtanh.f32 %v3212_v8  ;;  %v2617_v17 = vmul.f32 -1.442695, %v3212_v8 }
 0xf25   :  { %3316 = vpow2.f32 %v2619_v16 }
 0xf26   :  { %v3313_v11 = vpop.eup %3312  ;;  %3318 = vpow2.f32 %v2617_v17 }
 0xf27   :  { %1697 = vrot.lane.b32.xlu0 %v3313_v11, %s3394_s16 }
 0xf2e   :  { %v3315_v12 = vpop.eup %3314 }
 0xf2f   :  { %1596 = vrot.lane.b32.xlu1 %v3315_v12, %s3394_s16  ;;  %v3317_v35 = vpop.eup %3316 }
 0xf30   :  { %v1691_v18 = vadd.f32 1.0, %v3317_v35  ;;  %v3319_v19 = vpop.eup %3318 }
 0xf31   :  { %v1590_v21 = vadd.f32 1.0, %v3319_v19 }
 0xf32   :  { %3320 = vrcp.f32 %v1691_v18 }
 0xf33   :  { %3322 = vrcp.f32 %v1590_v21 }
 0xf3c   :  { %v3321_v23 = vpop.eup %3320 }
 0xf3d   :  { %v3323_v27 = vpop.eup %3322  ;;  %v1695_v30 = vmul.f32 %v3321_v23, %v3760_v54 }
 0xf3e   :  { %v1594_v34 = vmul.f32 %v3323_v27, %v3764_v56 }
 0xf99   :  { %v1698_v25 = vpop.permute.xlu0 %1697 }
 0xf9a   :  { %v1700_v26 = vmul.f32 %v3321_v23, %v1698_v25 }
 0xf9c   :  { %1702 = vrot.lane.b32.xlu0 %v1700_v26, %s3395_s3 }
 0xfa1   :  { %v1597_v28 = vpop.permute.xlu1 %1596 }
 0xfa2   :  { %v1599_v29 = vmul.f32 %v3323_v27, %v1597_v28 }
 0xfa4   :  { %1601 = vrot.lane.b32.xlu1 %v1599_v29, %s3395_s3 }
0x100e   :  { %v1703_v31 = vpop.permute.xlu0 %1702 }
0x100f   :  { %v3801_v33 = vadd.f32 %v1703_v31, %v1695_v30 }
0x1011   :  { %3324 = vtanh.f32 %v3801_v33 }
0x1016   :  { %v1602_v37 = vpop.permute.xlu1 %1601 }
0x1017   :  { %v3805_v40 = vadd.f32 %v1602_v37, %v1594_v34 }
0x1019   :  { %3326 = vtanh.f32 %v3805_v40 }
0x101b   :  { %v3325_v42 = vpop.eup %3324 }
0x101c   :  { %1708 = vrot.lane.b32.xlu0 %v3325_v42, %s3394_s16 }
0x1023   :  { %v3327_v36 = vpop.eup %3326 }
0x1024   :  { %1607 = vrot.lane.b32.xlu1 %v3327_v36, %s3394_s16 }
0x108e   :  { %v1709_v43 = vpop.permute.xlu0 %1708 }
0x108f   :  { %v1711_v44 = vmul.f32 %v3321_v23, %v1709_v43  ;;  %v230_v23 = vadd.f32 %v3533_v38, %v3538_v39 }
0x1091   :  { %1713 = vrot.lane.b32.xlu0 %v1711_v44, %s3395_s3 }
0x1096   :  { %v1608_v45 = vpop.permute.xlu1 %1607 }
0x1097   :  { %v1610_v46 = vmul.f32 %v3323_v27, %v1608_v45 }
0x1099   :  { %1612 = vrot.lane.b32.xlu1 %v1610_v46, %s3395_s3 }
0x1103   :  { %v1714_v47 = vpop.permute.xlu0 %1713 }
0x1104   :  { %2973 = vmatmul.mubr.msk.f32.vlgmr.msra.gmra.mrb[14].mxu0 %vm103_vm0, %v1714_v47  ;;  %2995 = vmatmul.mubr.msk.f32.vlgmr.msra.gmra.mrb[16].mxu1 %vm103_vm0, %v1714_v47 }
0x1105   :  { %3164 = vmatpush3.bf16.msra.mxu0 %v3590_v9  ;;  %2983 = vmatprep.mubr.msk.f32.mxu0 %vm3393_vm7, %v3392_v20 }
0x1106   :  { %3165 = vmatprep.subr.bf16.mxu0 %v3391_v13  ;;  %3176 = vmatpush3.bf16.msra.mxu1 %v3567_v0 }
0x1107   :  { %3177 = vmatprep.subr.bf16.mxu1 %v3391_v13  ;;  %3005 = vmatprep.mubr.msk.f32.mxu1 %vm3393_vm7, %v3392_v20 }
0x1109   :  { %3167 = vmatpush3.bf16.msra.mxu0 %v3601_v14 }
0x110a   :  { %3186 = vmatprep.subr.bf16.mxu0 %v3391_v13  ;;  %3179 = vmatpush3.bf16.msra.mxu1 %v3573_v2 }
0x110b   :  { %v1613_v48 = vpop.permute.xlu1 %1612  ;;  %3180 = vmatprep.subr.bf16.mxu1 %v3391_v13 }
0x110c   :  { %1616 = vst.msk [vmem:[#allocation2 + $0x20] sm:$0xff] %vm103_vm0, %v1613_v48  ;;  %2984 = vmatmul.mubr.msk.f32.vlgmr.msra.gmra.mrb[14].mxu0 %vm103_vm0, %v1613_v48 }
0x110d   :  { %3188 = vmatpush3.bf16.msra.mxu0 %v3490_v24  ;;  %3027 = vmatprep.mubr.msk.f32.mxu0 %vm3393_vm7, %v3392_v20 }
0x110e   :  { %3189 = vmatprep.subr.bf16.mxu0 %v3391_v13 }
0x1111   :  { %3191 = vmatpush3.bf16.msra.mxu0 %v3507_v32 }
0x1112   :  { %3192 = vmatprep.subr.bf16.mxu0 %v3391_v13 }
0x11d7   :  { %v1956_v50 = vpop.f32.mrb[16].mxu1 }
0x11d8   :  { %v1960_v51 = vadd.f32 %v1956_v50, %v225_v49  ;;  %v2996_v52 = vpop.f32.mrb[17].mxu1 }
0x11da   :  { %3328 = vtanh.f32 %v1960_v51  ;;  %v2624_v32 = vmul.f32 -1.442695, %v1960_v51 }
0x11df   :  { %v1855_v53 = vpop.f32.mrb[14].mxu0 }
0x11e0   :  { %v3213_v54 = vadd.f32 %v3630_v22, %v1855_v53  ;;  %v2985_v24 = vpop.f32.mrb[15].mxu0 }
0x11e2   :  { %3330 = vtanh.f32 %v3213_v54  ;;  %v2622_v56 = vmul.f32 -1.442695, %v3213_v54 }
0x11e3   :  { %3332 = vpow2.f32 %v2624_v32 }
0x11e4   :  { %v3329_v55 = vpop.eup %3328  ;;  %3334 = vpow2.f32 %v2622_v56 }
0x11e5   :  { %1970 = vrot.lane.b32.xlu0 %v3329_v55, %s3394_s16 }
0x11ec   :  { %v3331_v57 = vpop.eup %3330 }
0x11ed   :  { %1869 = vrot.lane.b32.xlu1 %v3331_v57, %s3394_s16  ;;  %v3333_v41 = vpop.eup %3332 }
0x11ee   :  { %v1964_v15 = vadd.f32 1.0, %v3333_v41  ;;  %v3335_v58 = vpop.eup %3334 }
0x11ef   :  { %v1863_v59 = vadd.f32 1.0, %v3335_v58 }
0x11f0   :  { %3336 = vrcp.f32 %v1964_v15 }
0x11f1   :  { %3338 = vrcp.f32 %v1863_v59 }
0x11fa   :  { %v3337_v60 = vpop.eup %3336 }
0x11fb   :  { %v3339_v63 = vpop.eup %3338  ;;  %v1968_v4 = vmul.f32 %v3337_v60, %v3801_v33 }
0x11fc   :  { %v1867_v7 = vmul.f32 %v3339_v63, %v3805_v40 }
0x1257   :  { %v1971_v61 = vpop.permute.xlu0 %1970 }
0x1258   :  { %v1973_v62 = vmul.f32 %v3337_v60, %v1971_v61 }
0x125a   :  { %1975 = vrot.lane.b32.xlu0 %v1973_v62, %s3395_s3 }
0x125f   :  { %v1870_v1 = vpop.permute.xlu1 %1869 }
0x1260   :  { %v1872_v3 = vmul.f32 %v3339_v63, %v1870_v1 }
0x1262   :  { %1874 = vrot.lane.b32.xlu1 %v1872_v3, %s3395_s3 }
0x12cc   :  { %v1976_v5 = vpop.permute.xlu0 %1975 }
0x12cd   :  { %v1978_v6 = vadd.f32 %v1976_v5, %v1968_v4 }
0x12cf   :  { %3340 = vtanh.f32 %v1978_v6 }
0x12d4   :  { %v1875_v8 = vpop.permute.xlu1 %1874 }
0x12d5   :  { %v1877_v10 = vadd.f32 %v1875_v8, %v1867_v7  ;;  %v3888_v7 = vld [vmem:[#allocation2] sm:$0xff] }
0x12d7   :  { %3342 = vtanh.f32 %v1877_v10 }
0x12d9   :  { %v3341_v11 = vpop.eup %3340 }
0x12da   :  { %1981 = vrot.lane.b32.xlu0 %v3341_v11, %s3394_s16  ;;  %v3893_v11 = vld [vmem:[#allocation2 + $0x20] sm:$0xff] }
0x12e1   :  { %v3343_v12 = vpop.eup %3342 }
0x12e2   :  { %1880 = vrot.lane.b32.xlu1 %v3343_v12, %s3394_s16  ;;  %v3895_v12 = vld [vmem:[#allocation2 + $0x10] sm:$0xff] }
0x134c   :  { %v1982_v16 = vpop.permute.xlu0 %1981 }
0x134d   :  { %v1984_v17 = vmul.f32 %v3337_v60, %v1982_v16 }
0x134f   :  { %1986 = vrot.lane.b32.xlu0 %v1984_v17, %s3395_s3 }
0x1354   :  { %v1881_v35 = vpop.permute.xlu1 %1880 }
0x1355   :  { %v1883_v18 = vmul.f32 %v3339_v63, %v1881_v35 }
0x1357   :  { %1885 = vrot.lane.b32.xlu1 %v1883_v18, %s3395_s3 }
0x13c1   :  { %v1987_v19 = vpop.permute.xlu0 %1986 }
0x13c2   :  { %3006 = vmatmul.mubr.msk.f32.vlgmr.msra.gmra.mrb[18].mxu1 %vm103_vm0, %v1987_v19  ;;  %3028 = vmatmul.mubr.msk.f32.vlgmr.msra.gmra.mrb[16].mxu0 %vm103_vm0, %v1987_v19  ;;  %v3901_v19 = vld [vmem:[#allocation2 + $0x18] sm:$0xff] }
0x13c3   :  { %3182 = vmatpush3.bf16.msra.mxu1 %v3590_v9  ;;  %3016 = vmatprep.mubr.msk.f32.mxu1 %vm3393_vm7, %v3392_v20 }
0x13c4   :  { %3183 = vmatprep.subr.bf16.mxu1 %v3391_v13  ;;  %3194 = vmatpush3.bf16.msra.mxu0 %v3567_v0 }
0x13c5   :  { %3195 = vmatprep.subr.bf16.mxu0 %v3391_v13  ;;  %3038 = vmatprep.mubr.msk.f32.mxu0 %vm3393_vm7, %v3392_v20 }
0x13c7   :  { %3185 = vmatpush3.bf16.msra.mxu1 %v3601_v14 }
0x13c8   :  { %3197 = vmatpush3.bf16.msra.mxu0 %v3573_v2 }
0x13c9   :  { %v1886_v21 = vpop.permute.xlu1 %1885  ;;  %3198 = vmatprep.subr.bf16.mxu0 %v3391_v13 }
0x13ca   :  { %1889 = vst.msk [vmem:[#allocation2 + $0x28] sm:$0xff] %vm103_vm0, %v1886_v21  ;;  %3017 = vmatmul.mubr.msk.f32.vlgmr.msra.gmra.mrb[18].mxu1 %vm103_vm0, %v1886_v21 }
0x1495   :  { %v2229_v0 = vpop.f32.mrb[16].mxu0 }
0x1496   :  { %v2233_v25 = vadd.f32 %v2229_v0, %v230_v23  ;;  %v3029_v26 = vpop.f32.mrb[17].mxu0 }
0x1498   :  { %3344 = vtanh.f32 %v2233_v25  ;;  %v2629_v31 = vmul.f32 -1.442695, %v2233_v25 }
0x149d   :  { %v2128_v27 = vpop.f32.mrb[18].mxu1 }
0x149e   :  { %v3214_v28 = vadd.f32 %v3630_v22, %v2128_v27  ;;  %v3018_v29 = vpop.f32.mrb[19].mxu1  ;;  %v3909_v27 = vld [vmem:[#allocation2 + $0x28] sm:$0xff] }
0x14a0   :  { %3346 = vtanh.f32 %v3214_v28  ;;  %v2627_v33 = vmul.f32 -1.442695, %v3214_v28 }
0x14a1   :  { %3348 = vpow2.f32 %v2629_v31 }
0x14a2   :  { %v3345_v2 = vpop.eup %3344  ;;  %3350 = vpow2.f32 %v2627_v33 }
0x14a3   :  { %2243 = vrot.lane.b32.xlu0 %v3345_v2, %s3394_s16 }
0x14aa   :  { %v3347_v30 = vpop.eup %3346 }
0x14ab   :  { %2142 = vrot.lane.b32.xlu1 %v3347_v30, %s3394_s16  ;;  %v3349_v38 = vpop.eup %3348 }
0x14ac   :  { %v2237_v39 = vadd.f32 1.0, %v3349_v38  ;;  %v3351_v34 = vpop.eup %3350 }
0x14ad   :  { %v2136_v37 = vadd.f32 1.0, %v3351_v34 }
0x14ae   :  { %3352 = vrcp.f32 %v2237_v39  ;;  %v14_v39 = vstv %s3952_s8 }
0x14af   :  { %3354 = vrcp.f32 %v2136_v37  ;;  %15 = vst [vmem:[#allocation3] sm:$0x1] %v14_v39 }
0x14b8   :  { %v3353_v40 = vpop.eup %3352 }
0x14b9   :  { %v3355_v43 = vpop.eup %3354  ;;  %v2241_v46 = vmul.f32 %v3353_v40, %v1978_v6  ;;  %v3886_v6 = vld [vmem:[#allocation2 + $0x8] sm:$0xff] }
0x14ba   :  { %v2140_v49 = vmul.f32 %v3355_v43, %v1877_v10 }
0x1515   :  { %v2244_v42 = vpop.permute.xlu0 %2243 }
0x1516   :  { %v2246_v36 = vmul.f32 %v3353_v40, %v2244_v42 }
0x1518   :  { %2248 = vrot.lane.b32.xlu0 %v2246_v36, %s3395_s3 }
0x151d   :  { %v2143_v44 = vpop.permute.xlu1 %2142 }
0x151e   :  { %v2145_v45 = vmul.f32 %v3355_v43, %v2143_v44 }
0x1520   :  { %2147 = vrot.lane.b32.xlu1 %v2145_v45, %s3395_s3 }
0x158a   :  { %v2249_v47 = vpop.permute.xlu0 %2248 }
0x158b   :  { %v2251_v48 = vadd.f32 %v2249_v47, %v2241_v46 }
0x158d   :  { %3356 = vtanh.f32 %v2251_v48 }
0x1592   :  { %v2148_v50 = vpop.permute.xlu1 %2147 }
0x1593   :  { %v2150_v51 = vadd.f32 %v2148_v50, %v2140_v49 }
0x1595   :  { %3358 = vtanh.f32 %v2150_v51 }
0x1597   :  { %v3357_v52 = vpop.eup %3356 }
0x1598   :  { %2254 = vrot.lane.b32.xlu0 %v3357_v52, %s3394_s16 }
0x159f   :  { %v3359_v53 = vpop.eup %3358 }
0x15a0   :  { %2153 = vrot.lane.b32.xlu1 %v3359_v53, %s3394_s16 }
0x160a   :  { %v2255_v54 = vpop.permute.xlu0 %2254 }
0x160b   :  { %v2257_v24 = vmul.f32 %v3353_v40, %v2255_v54 }
0x160d   :  { %2259 = vrot.lane.b32.xlu0 %v2257_v24, %s3395_s3 }
0x1612   :  { %v2154_v55 = vpop.permute.xlu1 %2153 }
0x1613   :  { %v2156_v57 = vmul.f32 %v3355_v43, %v2154_v55 }
0x1615   :  { %2158 = vrot.lane.b32.xlu1 %v2156_v57, %s3395_s3 }
0x167f   :  { %v2260_v32 = vpop.permute.xlu0 %2259 }
0x1680   :  { %3039 = vmatmul.mubr.msk.f32.vlgmr.msra.gmra.mrb[18].mxu0 %vm103_vm0, %v2260_v32 }
0x1681   :  { %3200 = vmatpush3.bf16.msra.mxu0 %v3590_v9  ;;  %3049 = vmatprep.mubr.msk.f32.mxu0 %vm3393_vm7, %v3392_v20 }
0x1682   :  { %3201 = vmatprep.subr.bf16.mxu0 %v3391_v13 }
0x1685   :  { %3203 = vmatpush3.bf16.msra.mxu0 %v3601_v14 }
0x1687   :  { %v2159_v56 = vpop.permute.xlu1 %2158 }
0x1688   :  { %2162 = vst.msk [vmem:[#allocation2 + $0x30] sm:$0xff] %vm103_vm0, %v2159_v56  ;;  %3050 = vmatmul.mubr.msk.f32.vlgmr.msra.gmra.mrb[18].mxu0 %vm103_vm0, %v2159_v56 }
0x168f   :  { %v3903_v21 = vld [vmem:[#allocation2 + $0x30] sm:$0xff] }
0x175b   :  { %v2401_v41 = vpop.f32.mrb[18].mxu0 }
0x175c   :  { %v3215_v15 = vadd.f32 %v3630_v22, %v2401_v41  ;;  %v3051_v58 = vpop.f32.mrb[19].mxu0 }
0x175e   :  { %3360 = vtanh.f32 %v3215_v15  ;;  %v2632_v9 = vmul.f32 -1.442695, %v3215_v15 }
0x1760   :  { %3362 = vpow2.f32 %v2632_v9 }
0x1768   :  { %v3361_v59 = vpop.eup %3360 }
0x1769   :  { %2415 = vrot.lane.b32.xlu0 %v3361_v59, %s3394_s16 }
0x176a   :  { %v3363_v20 = vpop.eup %3362 }
0x176b   :  { %v2409_v60 = vadd.f32 1.0, %v3363_v20 }
0x176d   :  { %3364 = vrcp.f32 %v2409_v60 }
0x1777   :  { %v3365_v13 = vpop.eup %3364 }
0x1778   :  { %v2413_v62 = vmul.f32 %v3365_v13, %v2150_v51 }
0x17db   :  { %v2416_v14 = vpop.permute.xlu0 %2415 }
0x17dc   :  { %v2418_v61 = vmul.f32 %v3365_v13, %v2416_v14 }
0x17de   :  { %2420 = vrot.lane.b32.xlu1 %v2418_v61, %s3395_s3 }
0x1850   :  { %v2421_v63 = vpop.permute.xlu1 %2420 }
0x1851   :  { %v2423_v1 = vadd.f32 %v2421_v63, %v2413_v62 }
0x1853   :  { %3366 = vtanh.f32 %v2423_v1 }
0x185d   :  { %v3367_v22 = vpop.eup %3366 }
0x185e   :  { %2426 = vrot.lane.b32.xlu0 %v3367_v22, %s3394_s16 }
0x18d0   :  { %v2427_v3 = vpop.permute.xlu0 %2426 }
0x18d1   :  { %v2429_v4 = vmul.f32 %v3365_v13, %v2427_v3 }
0x18d3   :  { %2431 = vrot.lane.b32.xlu1 %v2429_v4, %s3395_s3 }
0x1945   :  { %v2432_v5 = vpop.permute.xlu1 %2431 }
0x1946   :  { %2435 = vst.msk [vmem:[#allocation2 + $0x38] sm:$0xff] %vm103_vm0, %v2432_v5  ;;  %v2445_v8 = vmul.f32 %v3886_v6, %v2432_v5  ;;  %v2444_v10 = vmul.f32 %v3888_v7, %v2432_v5  ;;  %v2448_v35 = vmul.f32 %v3893_v11, %v2432_v5  ;;  %v2446_v18 = vmul.f32 %v3895_v12, %v2432_v5 }
0x1947   :  { %v2447_v25 = vmul.f32 %v3901_v19, %v2432_v5  ;;  %v2450_v26 = vmul.f32 %v3903_v21, %v2432_v5  ;;  %v2449_v2 = vmul.f32 %v3909_v27, %v2432_v5 }
0x1948   :  { %v2455_v16 = vsel %vm103_vm0, %v2445_v8, 0.0  ;;  %v2452_v17 = vsel %vm103_vm0, %v2444_v10, 0.0  ;;  %v2464_v23 = vsel %vm103_vm0, %v2448_v35, 0.0  ;;  %v2458_v0 = vsel %vm103_vm0, %v2446_v18, 0.0 }
0x1949   :  { %2456 = vadd.xlane.f32.xlu1 %v2455_v16  ;;  %2453 = vadd.xlane.f32.xlu0 %v2452_v17  ;;  %v2461_v28 = vsel %vm103_vm0, %v2447_v25, 0.0  ;;  %v2470_v29 = vsel %vm103_vm0, %v2450_v26, 0.0  ;;  %v2467_v31 = vsel %vm103_vm0, %v2449_v2, 0.0 }
0x194d   :  { %2465 = vadd.xlane.f32.xlu1 %v2464_v23  ;;  %2459 = vadd.xlane.f32.xlu0 %v2458_v0  ;;  %v3914_v30 = vld [vmem:[#allocation2 + $0x38] sm:$0xff] }
0x194e   :  { %v2451_v33 = vmul.f32 %v3914_v30, %v2432_v5 }
0x1950   :  { %v2473_v38 = vsel %vm103_vm0, %v2451_v33, 0.0 }
0x1951   :  { %2462 = vadd.xlane.f32.xlu0 %v2461_v28  ;;  %2471 = vadd.xlane.f32.xlu1 %v2470_v29 }
0x1955   :  { %2468 = vadd.xlane.f32.xlu0 %v2467_v31 }
0x1959   :  { %2474 = vadd.xlane.f32.xlu0 %v2473_v38 }
0x19d6   :  { %v2454_v34 = vpop.xlane.xlu0 %2453  ;;  %v2457_v37 = vpop.xlane.xlu1 %2456 }
0x19da   :  { %v2460_v40 = vpop.xlane.xlu0 %2459  ;;  %v2466_v42 = vpop.xlane.xlu1 %2465 }
0x19db   :  { %v2476_v47 = vmax.f32 %v2454_v34, %v2466_v42 }
0x19de   :  { %v2463_v36 = vpop.xlane.xlu0 %2462  ;;  %v2472_v44 = vpop.xlane.xlu1 %2471 }
0x19df   :  { %v2478_v48 = vmax.f32 %v2460_v40, %v2472_v44 }
0x19e2   :  { %v2469_v43 = vpop.xlane.xlu0 %2468 }
0x19e3   :  { %v2477_v45 = vmax.f32 %v2457_v37, %v2469_v43 }
0x19e5   :  { %v2480_v50 = vmax.f32 %v2476_v47, %v2477_v45 }
0x19e6   :  { %v2475_v46 = vpop.xlane.xlu0 %2474 }
0x19e7   :  { %v2479_v49 = vmax.f32 %v2463_v36, %v2475_v46 }
0x19e9   :  { %v2481_v51 = vmax.f32 %v2478_v48, %v2479_v49 }
0x19eb   :  { %v2482_v52 = vmax.f32 %v2480_v50, %v2481_v51 }
0x19ed   :  { %v2483_v53 = vsub.f32 %v2454_v34, %v2482_v52  ;;  %v2484_v54 = vsub.f32 %v2457_v37, %v2482_v52  ;;  %v2485_v24 = vsub.f32 %v2460_v40, %v2482_v52  ;;  %v2486_v55 = vsub.f32 %v2463_v36, %v2482_v52 }
0x19ee   :  { %v2487_v56 = vsub.f32 %v2466_v42, %v2482_v52  ;;  %v2488_v15 = vsub.f32 %v2469_v43, %v2482_v52  ;;  %v2489_v59 = vsub.f32 %v2472_v44, %v2482_v52  ;;  %v2490_v20 = vsub.f32 %v2475_v46, %v2482_v52 }
0x19ef   :  { %v2491_v57 = vmul.f32 1.442695, %v2483_v53  ;;  %v2493_v32 = vmul.f32 1.442695, %v2484_v54  ;;  %v2495_v41 = vmul.f32 1.442695, %v2485_v24 }
0x19f0   :  { %v2497_v58 = vmul.f32 1.442695, %v2486_v55  ;;  %v2499_v9 = vmul.f32 1.442695, %v2487_v56  ;;  %v2501_v60 = vmul.f32 1.442695, %v2488_v15 }
0x19f1   :  { %3368 = vpow2.f32 %v2491_v57  ;;  %v2503_v13 = vmul.f32 1.442695, %v2489_v59  ;;  %v2505_v14 = vmul.f32 1.442695, %v2490_v20  ;;  %v2634_v55 = vld [vmem:[#allocation3] ss:$0 sm:$0xff] }
0x19f2   :  { %3370 = vpow2.f32 %v2493_v32 }
0x19f3   :  { %3372 = vpow2.f32 %v2495_v41 }
0x19f4   :  { %3374 = vpow2.f32 %v2497_v58 }
0x19f5   :  { %3376 = vpow2.f32 %v2499_v9 }
0x19f6   :  { %3378 = vpow2.f32 %v2501_v60 }
0x19f7   :  { %3380 = vpow2.f32 %v2503_v13 }
0x19f8   :  { %3382 = vpow2.f32 %v2505_v14 }
0x19fb   :  { %v3369_v61 = vpop.eup %3368 }
0x19fc   :  { %v3371_v62 = vpop.eup %3370 }
0x19fd   :  { %v2507_v63 = vadd.f32 %v3371_v62, %v3369_v61  ;;  %v3373_v1 = vpop.eup %3372 }
0x19fe   :  { %v3375_v3 = vpop.eup %3374 }
0x19ff   :  { %v2508_v22 = vadd.f32 %v3373_v1, %v2507_v63  ;;  %v3377_v5 = vpop.eup %3376 }
0x1a00   :  { %v3379_v10 = vpop.eup %3378 }
0x1a01   :  { %v2509_v4 = vadd.f32 %v3375_v3, %v2508_v22  ;;  %v3381_v17 = vpop.eup %3380 }
0x1a02   :  { %v3383_v18 = vpop.eup %3382 }
0x1a03   :  { %v2510_v8 = vadd.f32 %v3377_v5, %v2509_v4 }
0x1a05   :  { %v2511_v16 = vadd.f32 %v3379_v10, %v2510_v8 }
0x1a07   :  { %v2512_v35 = vadd.f32 %v3381_v17, %v2511_v16 }
0x1a09   :  { %v2513_v23 = vadd.f32 %v3383_v18, %v2512_v35 }
0x1a0b   :  { %3384 = vrcp.f32 %v2513_v23 }
0x1a15   :  { %v3385_v0 = vpop.eup %3384 }
0x1a16   :  { %v2515_v25 = vmul.f32 %v3385_v0, %v3369_v61  ;;  %v2516_v26 = vmul.f32 %v3385_v0, %v3371_v62  ;;  %v2517_v28 = vmul.f32 %v3385_v0, %v3373_v1  ;;  %v2518_v29 = vmul.f32 %v3385_v0, %v3375_v3 }
0x1a17   :  { %v2519_v2 = vmul.f32 %v3385_v0, %v3377_v5  ;;  %v2520_v39 = vmul.f32 %v3385_v0, %v3379_v10  ;;  %v2521_v36 = vmul.f32 %v3385_v0, %v3381_v17  ;;  %v2522_v46 = vmul.f32 %v3385_v0, %v3383_v18 }
0x1a18   :  { %v2523_v31 = vmul.f32 %v2515_v25, %v3888_v7  ;;  %v2524_v33 = vmul.f32 %v2516_v26, %v3886_v6  ;;  %v2525_v38 = vmul.f32 %v2517_v28, %v3895_v12  ;;  %v2526_v34 = vmul.f32 %v2518_v29, %v3901_v19 }
0x1a19   :  { %v2527_v43 = vmul.f32 %v2519_v2, %v3893_v11  ;;  %v2528_v7 = vmul.f32 %v2520_v39, %v3909_v27  ;;  %v2529_v47 = vmul.f32 %v2521_v36, %v3903_v21  ;;  %v2530_v49 = vmul.f32 %v2522_v46, %v3914_v30  ;;  %v2633_v27 = vld [vmem:[%s3953_s7] ss:$0 sm:$0xff] }
0x1a1a   :  { %v2531_v37 = vsel %vm103_vm0, %v2523_v31, 0.0  ;;  %v2532_v40 = vsel %vm103_vm0, %v2524_v33, 0.0  ;;  %v2534_v44 = vsel %vm103_vm0, %v2525_v38, 0.0  ;;  %v2536_v6 = vsel %vm103_vm0, %v2526_v34, 0.0 }
0x1a1b   :  { %v2533_v42 = vadd.f32 %v2532_v40, %v2531_v37  ;;  %v2538_v19 = vsel %vm103_vm0, %v2527_v43, 0.0  ;;  %v2540_v50 = vsel %vm103_vm0, %v2528_v7, 0.0  ;;  %v2542_v11 = vsel %vm103_vm0, %v2529_v47, 0.0 }
0x1a1c   :  { %v2544_v53 = vsel %vm103_vm0, %v2530_v49, 0.0 }
0x1a1d   :  { %v2535_v45 = vadd.f32 %v2534_v44, %v2533_v42 }
0x1a1f   :  { %v2537_v12 = vadd.f32 %v2536_v6, %v2535_v45 }
0x1a21   :  { %v2539_v48 = vadd.f32 %v2538_v19, %v2537_v12 }
0x1a23   :  { %v2541_v51 = vadd.f32 %v2540_v50, %v2539_v48 }
0x1a25   :  { %v2543_v52 = vadd.f32 %v2542_v11, %v2541_v51 }
0x1a27   :  { %v2545_v54 = vadd.f32 %v2544_v53, %v2543_v52 }
0x1a29   :  { %v2553_v24 = vmul.f32 %v2633_v27, %v2545_v54 }
0x1a2b   :  { %v2554_v21 = vsel %vm103_vm0, %v2553_v24, 0.0 }
0x1a2c   :  { %2555 = vadd.xlane.f32.xlu1 %v2554_v21 }
0x1ab9   :  { %v2556_v57 = vpop.xlane.xlu1 %2555 }
0x1aba   :  { %v2564_v30 = vadd.f32 %v2634_v55, %v2556_v57 }
0x1abc   :  { %v2635_v32 = vmul.f32 -1.442695, %v2564_v30 }
0x1abe   :  { %3386 = vpow2.f32 %v2635_v32 }
0x1ac8   :  { %v3387_v56 = vpop.eup %3386 }
0x1ac9   :  { %v2568_v41 = vadd.f32 1.0, %v3387_v56 }
0x1acb   :  { %3388 = vrcp.f32 %v2568_v41 }
0x1ad5   :  { %v3389_v15 = vpop.eup %3388 }
0x1ad6   :  { %2572 = vst.msk [vmem:[%s3954_s9] sm:$0xff] %vm2571_vm10, %v3389_v15 }

</bundles_post_ra>
